<compile_context>
chip_gen: v7x
topology: tpu7x:2x2x1
jax: 0.10.0
libtpu: 0.0.40
codegen_flags: <defaults>
</compile_context>

<pallas_src>
import functools

import jax
import jax.numpy as jnp
from jax import lax
from jax.experimental import pallas as pl
from jax.experimental.pallas import tpu as pltpu

EPS = 1e-5                       # PyTorch GroupNorm default eps
TILE_HW = 512                    # pixel rows per block in the two-pass fallback
FUSED_VMEM_BUDGET = 8 * 1024 * 1024   # bytes; per-sample budget for the fused path


# ----------------------------------------------------------------------------
# Pallas kernels
# ----------------------------------------------------------------------------
def _fused_convblock_kernel(x_ref, w_ref, b_ref, gamma_ref, beta_ref, gmat_ref,
                            o_ref):
    """Whole ConvBlock for one sample: 1x1 conv + GroupNorm + ReLU, fused.

    x_ref     : (1, HW, Cin)
    w_ref     : (Cin, Cout)
    b/gamma/beta : (1, Cout)
    gmat_ref  : (Cout, Cout)  group-averaging matrix (1/(HW*cs) within a group)
    o_ref     : (1, HW, Cout)
    """
    x = x_ref[0].astype(jnp.bfloat16)
    w = w_ref[...].astype(jnp.bfloat16)
    y = jnp.dot(x, w, preferred_element_type=jnp.float32) + b_ref[...]   # (HW, Cout)

    s = jnp.sum(y, axis=0, keepdims=True)            # (1, Cout)
    ss = jnp.sum(y * y, axis=0, keepdims=True)       # (1, Cout)
    # Per-group mean / E[y^2] broadcast back to channels via a tiny matmul.
    mean = jnp.dot(s, gmat_ref[...], preferred_element_type=jnp.float32)
    meansq = jnp.dot(ss, gmat_ref[...], preferred_element_type=jnp.float32)
    var = jnp.maximum(meansq - mean * mean, 0.0)     # biased var (PyTorch GN)
    scale = gamma_ref[...] * lax.rsqrt(var + EPS)    # (1, Cout)
    shift = beta_ref[...] - mean * scale
    o_ref[0] = jnp.maximum(y * scale + shift, 0.0)   # single lane-dense store


def _conv_stats_kernel(x_ref, w_ref, b_ref, stats_ref, *, hw, tile):
    """Fallback pass 1: per-channel sum / sumsq of the 1x1-conv output (no y store)."""
    t = pl.program_id(1)

    @pl.when(t == 0)
    def _():
        stats_ref[...] = jnp.zeros_like(stats_ref)

    x = x_ref[0].astype(jnp.bfloat16)
    w = w_ref[...].astype(jnp.bfloat16)
    y = jnp.dot(x, w, preferred_element_type=jnp.float32) + b_ref[...]

    if hw % tile != 0:                               # mask rows of a partial last tile
        valid = hw - t * tile
        mask = lax.broadcasted_iota(jnp.int32, (tile, 1), 0) < valid
        y = jnp.where(mask, y, 0.0)
    s = jnp.sum(y, axis=0, keepdims=True)            # (1, Cout)
    ss = jnp.sum(y * y, axis=0, keepdims=True)       # (1, Cout)
    stats_ref[0] += jnp.concatenate([s, ss], axis=0) # (2, Cout), resident accumulator


def _conv_affine_relu_kernel(x_ref, w_ref, b_ref, scale_ref, shift_ref, o_ref):
    """Fallback pass 2: recompute conv, apply precomputed GroupNorm affine + ReLU."""
    x = x_ref[0].astype(jnp.bfloat16)
    w = w_ref[...].astype(jnp.bfloat16)
    y = jnp.dot(x, w, preferred_element_type=jnp.float32) + b_ref[...]
    o_ref[0] = jnp.maximum(y * scale_ref[0] + shift_ref[0], 0.0)


def _residual_conv_kernel(y_ref, x_ref, w_ref, b_ref, o_ref):
    """Final conv_out applied to (y + x): out = (y + x) @ W + b."""
    s = (y_ref[0] + x_ref[0]).astype(jnp.bfloat16)
    w = w_ref[...].astype(jnp.bfloat16)
    o_ref[0] = jnp.dot(s, w, preferred_element_type=jnp.float32) + b_ref[...]


# ----------------------------------------------------------------------------
# ConvBlock wrapper (channels-last)
# ----------------------------------------------------------------------------
def conv_block_pallas(x_flat, w, b, gamma, beta, groups):
    """ConvBlock (1x1 conv + GroupNorm + ReLU) on a (N, HW, Cin) channels-last tensor."""
    N, HW, Cin = x_flat.shape
    Cin_w, Cout = w.shape
    assert Cin_w == Cin, (Cin_w, Cin)
    assert Cout % groups == 0, (Cout, groups)
    cs = Cout // groups

    b2 = b.reshape(1, Cout)
    fused_bytes = HW * (2 * Cin + 3 * Cout) * 4      # x(dbl-buf) + out(dbl-buf) + y
    if fused_bytes <= FUSED_VMEM_BUDGET:
        # ---- fused single-pass path: one read of x, one write of the output ----
        gidx = jnp.arange(Cout, dtype=jnp.int32) // cs
        gmat = (gidx[:, None] == gidx[None, :]).astype(jnp.float32) / float(HW * cs)
        return pl.pallas_call(
            _fused_convblock_kernel,
            out_shape=jax.ShapeDtypeStruct((N, HW, Cout), jnp.float32),
            grid=(N,),
            in_specs=[
                pl.BlockSpec((1, HW, Cin), lambda n: (n, 0, 0)),
                pl.BlockSpec((Cin, Cout), lambda n: (0, 0)),
                pl.BlockSpec((1, Cout), lambda n: (0, 0)),
                pl.BlockSpec((1, Cout), lambda n: (0, 0)),
                pl.BlockSpec((1, Cout), lambda n: (0, 0)),
                pl.BlockSpec((Cout, Cout), lambda n: (0, 0)),
            ],
            out_specs=pl.BlockSpec((1, HW, Cout), lambda n: (n, 0, 0)),
            compiler_params=pltpu.CompilerParams(
                dimension_semantics=("parallel",)),
        )(x_flat, w, b2, gamma.reshape(1, Cout), beta.reshape(1, Cout), gmat)

    # ---- two-pass recompute path (large HW): stats, then conv+affine+relu ----
    tile = HW if HW <= TILE_HW else TILE_HW
    T = pl.cdiv(HW, tile)

    stats = pl.pallas_call(
        functools.partial(_conv_stats_kernel, hw=HW, tile=tile),
        out_shape=jax.ShapeDtypeStruct((N, 2, Cout), jnp.float32),
        grid=(N, T),
        in_specs=[
            pl.BlockSpec((1, tile, Cin), lambda n, t: (n, t, 0)),
            pl.BlockSpec((Cin, Cout), lambda n, t: (0, 0)),
            pl.BlockSpec((1, Cout), lambda n, t: (0, 0)),
        ],
        out_specs=pl.BlockSpec((1, 2, Cout), lambda n, t: (n, 0, 0)),
        compiler_params=pltpu.CompilerParams(
            dimension_semantics=("parallel", "arbitrary")),
    )(x_flat, w, b2)

    # Tiny per-group reduction + affine precompute (O(N*Cout)) in plain JAX.
    cnt = float(HW * cs)
    gsum = stats[:, 0].reshape(N, groups, cs).sum(-1)
    gsq = stats[:, 1].reshape(N, groups, cs).sum(-1)
    mean = gsum / cnt
    var = jnp.maximum(gsq / cnt - mean * mean, 0.0)
    inv = lax.rsqrt(var + EPS)                       # (N, G)
    inv_c = jnp.repeat(inv, cs, axis=1)              # (N, Cout)
    mean_c = jnp.repeat(mean, cs, axis=1)
    scale = (inv_c * gamma[None]).reshape(N, 1, Cout)
    shift = (beta[None] - mean_c * inv_c * gamma[None]).reshape(N, 1, Cout)

    return pl.pallas_call(
        _conv_affine_relu_kernel,
        out_shape=jax.ShapeDtypeStruct((N, HW, Cout), jnp.float32),
        grid=(N, T),
        in_specs=[
            pl.BlockSpec((1, tile, Cin), lambda n, t: (n, t, 0)),
            pl.BlockSpec((Cin, Cout), lambda n, t: (0, 0)),
            pl.BlockSpec((1, Cout), lambda n, t: (0, 0)),
            pl.BlockSpec((1, 1, Cout), lambda n, t: (n, 0, 0)),
            pl.BlockSpec((1, 1, Cout), lambda n, t: (n, 0, 0)),
        ],
        out_specs=pl.BlockSpec((1, tile, Cout), lambda n, t: (n, t, 0)),
        compiler_params=pltpu.CompilerParams(
            dimension_semantics=("parallel", "parallel")),
    )(x_flat, w, b2, scale, shift)


def conv_out_residual_pallas(y_flat, x_flat, w, b):
    """conv_out applied to (y + x), both (N, HW, C) channels-last."""
    N, HW, C = x_flat.shape
    Cout = w.shape[1]
    tile = HW if HW <= TILE_HW else TILE_HW
    T = pl.cdiv(HW, tile)
    return pl.pallas_call(
        _residual_conv_kernel,
        out_shape=jax.ShapeDtypeStruct((N, HW, Cout), jnp.float32),
        grid=(N, T),
        in_specs=[
            pl.BlockSpec((1, tile, C), lambda n, t: (n, t, 0)),
            pl.BlockSpec((1, tile, C), lambda n, t: (n, t, 0)),
            pl.BlockSpec((C, Cout), lambda n, t: (0, 0)),
            pl.BlockSpec((1, Cout), lambda n, t: (0, 0)),
        ],
        out_specs=pl.BlockSpec((1, tile, Cout), lambda n, t: (n, t, 0)),
        compiler_params=pltpu.CompilerParams(
            dimension_semantics=("parallel", "parallel")),
    )(y_flat, x_flat, w, b.reshape(1, Cout))


# ----------------------------------------------------------------------------
# FourierUnit / SpectralTransform forward (FFTs stay as JAX glue)
# ----------------------------------------------------------------------------
def fourier_unit_nhwc(x_nhwc, blk, groups):
    """FourierUnit.forward on an NHWC tensor; both halves batched into one call."""
    B, H, W, C = x_nhwc.shape
    bot = x_nhwc[:, :-1]                                   # (B, H-1, W, C)
    top = x_nhwc[:, 1:]
    both = jnp.concatenate([bot, top], axis=0)             # (2B, H-1, W, C)
    Hm = H - 1
    # TODO(synk): FFT has no Pallas TPU primitive; rfftn/irfftn remain XLA ops.
    yc = jnp.fft.rfftn(both, axes=(2, 1))                  # real transform over H axis
    Hf = yc.shape[1]                                       # Hm//2 + 1
    yri = jnp.concatenate([yc.real, yc.imag], axis=-1)     # (2B, Hf, W, 2C)
    yri = conv_block_pallas(yri.reshape(2 * B, Hf * W, 2 * C),
                            blk["w"], blk["b"], blk["gamma"], blk["beta"], groups)
    yri = yri.reshape(2 * B, Hf, W, 2 * C)
    yc = lax.complex(yri[..., :C], yri[..., C:])
    y = jnp.fft.irfftn(yc, s=(W, Hm), axes=(2, 1))         # explicit s pins output sizes
    bot, top = y[:B], y[B:]
    return jnp.concatenate([bot[:, : H // 2], top[:, H // 2 - 1:]], axis=1)


def spectral_transform(x_nchw, params, groups):
    B, C, H, W = x_nchw.shape
    # Single NCHW->NHWC transpose at entry; channels-last everywhere else.
    x_flat = jnp.transpose(x_nchw, (0, 2, 3, 1)).reshape(B, H * W, C)
    x_flat = conv_block_pallas(x_flat, params["conv_in"]["w"], params["conv_in"]["b"],
                               params["conv_in"]["gamma"], params["conv_in"]["beta"],
                               groups)
    y_nhwc = fourier_unit_nhwc(x_flat.reshape(B, H, W, C), params["fu_block"], groups)
    out_flat = conv_out_residual_pallas(y_nhwc.reshape(B, H * W, C), x_flat,
                                        params["conv_out"]["w"], params["conv_out"]["b"])
    return jnp.transpose(out_flat.reshape(B, H, W, C), (0, 3, 1, 2))


# ----------------------------------------------------------------------------
# Pure-JAX reference (same bf16-matmul numerics) for a self-check
# ----------------------------------------------------------------------------
def _convblock_ref(x_flat, w, b, gamma, beta, groups):
    N, HW, _ = x_flat.shape
    Cout = w.shape[1]
    y = jnp.dot(x_flat.astype(jnp.bfloat16), w.astype(jnp.bfloat16),
                preferred_element_type=jnp.float32) + b[None, None]
    cs = Cout // groups
    yg = y.reshape(N, HW, groups, cs)
    mean = yg.mean(axis=(1, 3), keepdims=True)
    var = ((yg - mean) ** 2).mean(axis=(1, 3), keepdims=True)
    yn = ((yg - mean) * lax.rsqrt(var + EPS)).reshape(N, HW, Cout)
    return jnp.maximum(yn * gamma[None, None] + beta[None, None], 0.0)


def spectral_transform_ref(x_nchw, params, groups):
    B, C, H, W = x_nchw.shape
    x_flat = jnp.transpose(x_nchw, (0, 2, 3, 1)).reshape(B, H * W, C)
    x_flat = _convblock_ref(x_flat, params["conv_in"]["w"], params["conv_in"]["b"],
                            params["conv_in"]["gamma"], params["conv_in"]["beta"],
                            groups)
    x_nhwc = x_flat.reshape(B, H, W, C)

    def fu_half(z):
        Hm = z.shape[1]
        yc = jnp.fft.rfftn(z, axes=(2, 1))
        Hf = yc.shape[1]
        yri = jnp.concatenate([yc.real, yc.imag], axis=-1)
        yri = _convblock_ref(yri.reshape(B, Hf * W, 2 * C),
                             params["fu_block"]["w"], params["fu_block"]["b"],
                             params["fu_block"]["gamma"], params["fu_block"]["beta"],
                             groups)
        yri = yri.reshape(B, Hf, W, 2 * C)
        yc2 = lax.complex(yri[..., :C], yri[..., C:])
        return jnp.fft.irfftn(yc2, s=(W, Hm), axes=(2, 1))

    bot = fu_half(x_nhwc[:, :-1])
    top = fu_half(x_nhwc[:, 1:])
    y_nhwc = jnp.concatenate([bot[:, :H // 2], top[:, H // 2 - 1:]], axis=1)
    z = y_nhwc.reshape(B, H * W, C) + x_flat
    out = jnp.dot(z.astype(jnp.bfloat16), params["conv_out"]["w"].astype(jnp.bfloat16),
                  preferred_element_type=jnp.float32) + params["conv_out"]["b"][None, None]
    return jnp.transpose(out.reshape(B, H, W, C), (0, 3, 1, 2))


# ----------------------------------------------------------------------------
# Deterministic parameter init (synthetic; no checkpoint)
# ----------------------------------------------------------------------------
def init_params(key, channels):
    ks = jax.random.split(key, 6)
    s = 0.1
    return {
        "conv_in": {
            "w": s * jax.random.normal(ks[0], (channels, channels), jnp.float32),
            "b": s * jax.random.normal(ks[1], (channels,), jnp.float32),
            "gamma": jnp.ones((channels,), jnp.float32),
            "beta": jnp.zeros((channels,), jnp.float32),
        },
        "fu_block": {
            "w": s * jax.random.normal(ks[2], (2 * channels, 2 * channels), jnp.float32),
            "b": s * jax.random.normal(ks[3], (2 * channels,), jnp.float32),
            "gamma": jnp.ones((2 * channels,), jnp.float32),
            "beta": jnp.zeros((2 * channels,), jnp.float32),
        },
        "conv_out": {
            "w": s * jax.random.normal(ks[4], (channels, channels), jnp.float32),
            "b": s * jax.random.normal(ks[5], (channels,), jnp.float32),
        },
    }


if __name__ == "__main__":
    key = jax.random.PRNGKey(0)
    kx, kp = jax.random.split(key)

    # H must be odd: the module's slice/irfft arithmetic only restores the full
    # height H when H-1 is even (otherwise y + x would shape-mismatch in PyTorch too).
    B, C, H, W = 2, 4, 9, 16
    chgn = 2  # GroupNorm groups (channels and 2*channels both divisible)

    x = jax.random.normal(kx, (B, C, H, W), dtype=jnp.float32)
    params = init_params(kp, C)

    fwd = jax.jit(functools.partial(spectral_transform, groups=chgn))
    out = fwd(x, params)
    jax.block_until_ready(out)
    assert out.shape == (B, C, H, W), out.shape
    assert out.dtype == jnp.float32

    ref = jax.jit(functools.partial(spectral_transform_ref, groups=chgn))(x, params)
    jax.block_until_ready(ref)
    err = float(jnp.max(jnp.abs(out - ref)))
    assert err < 5e-2, f"max abs err vs reference: {err}"
    print("KERNEL_OK")
</pallas_src>

<mosaic_0001>
module attributes {stable_mosaic.version = 11 : i64} {
  func.func @_fused_convblock_kernel(%arg0: i32, %arg1: memref<1x144x4xf32, #tpu.memory_space<vmem>>, %arg2: memref<4x4xf32, #tpu.memory_space<vmem>>, %arg3: memref<1x4xf32, #tpu.memory_space<vmem>>, %arg4: memref<1x4xf32, #tpu.memory_space<vmem>>, %arg5: memref<1x4xf32, #tpu.memory_space<vmem>>, %arg6: memref<4x4xf32, #tpu.memory_space<vmem>>, %arg7: memref<1x144x4xf32, #tpu.memory_space<vmem>>) attributes {dimension_semantics = [#tpu.dimension_semantics<parallel>], iteration_bounds = array<i64: 2>, scalar_prefetch = 0 : i64, scratch_operands = 0 : i64, tpu.core_type = #tpu.core_type<tc>, window_params = [{transform_indices = @transform_0, window_bounds = array<i64: 1, 144, 4>}, {pipeline_mode = #tpu.pipeline_mode<synchronous>, transform_indices = @transform_1, window_bounds = array<i64: 4, 4>}, {pipeline_mode = #tpu.pipeline_mode<synchronous>, transform_indices = @transform_2, window_bounds = array<i64: 1, 4>}, {pipeline_mode = #tpu.pipeline_mode<synchronous>, transform_indices = @transform_3, window_bounds = array<i64: 1, 4>}, {pipeline_mode = #tpu.pipeline_mode<synchronous>, transform_indices = @transform_4, window_bounds = array<i64: 1, 4>}, {pipeline_mode = #tpu.pipeline_mode<synchronous>, transform_indices = @transform_5, window_bounds = array<i64: 4, 4>}, {transform_indices = @transform_6, window_bounds = array<i64: 1, 144, 4>}]} {
    %c0 = arith.constant 0 : index
    %c0_0 = arith.constant 0 : index
    %c0_1 = arith.constant 0 : index
    %0 = vector.load %arg1[%c0, %c0_0, %c0_1] : memref<1x144x4xf32, #tpu.memory_space<vmem>>, vector<1x144x4xf32>
    %1 = vector.shape_cast %0 : vector<1x144x4xf32> to vector<144x4xf32>
    %2 = arith.truncf %1 : vector<144x4xf32> to vector<144x4xbf16>
    %c0_2 = arith.constant 0 : index
    %c0_3 = arith.constant 0 : index
    %3 = vector.load %arg2[%c0_2, %c0_3] : memref<4x4xf32, #tpu.memory_space<vmem>>, vector<4x4xf32>
    %4 = arith.truncf %3 : vector<4x4xf32> to vector<4x4xbf16>
    %cst = arith.constant dense<0.000000e+00> : vector<144x4xf32>
    %5 = tpu.matmul %2, %4, %cst {dimension_numbers = #tpu.dot_dimension_numbers<[1], [0], [0], [1], [0, 0, 1, 1], [], []>} : vector<144x4xbf16>, vector<4x4xbf16>, vector<144x4xf32> -> vector<144x4xf32>
    %c0_4 = arith.constant 0 : index
    %c0_5 = arith.constant 0 : index
    %6 = vector.load %arg3[%c0_4, %c0_5] : memref<1x4xf32, #tpu.memory_space<vmem>>, vector<1x4xf32>
    %7 = vector.broadcast %6 : vector<1x4xf32> to vector<144x4xf32>
    %8 = arith.addf %5, %7 : vector<144x4xf32>
    %cst_6 = arith.constant dense<0.000000e+00> : vector<4xf32>
    %9 = vector.multi_reduction <add>, %8, %cst_6 [0] : vector<144x4xf32> to vector<4xf32>
    %10 = vector.shape_cast %9 : vector<4xf32> to vector<1x4xf32>
    %11 = arith.mulf %8, %8 : vector<144x4xf32>
    %cst_7 = arith.constant dense<0.000000e+00> : vector<4xf32>
    %12 = vector.multi_reduction <add>, %11, %cst_7 [0] : vector<144x4xf32> to vector<4xf32>
    %13 = vector.shape_cast %12 : vector<4xf32> to vector<1x4xf32>
    %c0_8 = arith.constant 0 : index
    %c0_9 = arith.constant 0 : index
    %14 = vector.load %arg6[%c0_8, %c0_9] : memref<4x4xf32, #tpu.memory_space<vmem>>, vector<4x4xf32>
    %cst_10 = arith.constant dense<0.000000e+00> : vector<1x4xf32>
    %15 = tpu.matmul %10, %14, %cst_10 {dimension_numbers = #tpu.dot_dimension_numbers<[1], [0], [0], [1], [0, 0, 1, 1], [], []>} : vector<1x4xf32>, vector<4x4xf32>, vector<1x4xf32> -> vector<1x4xf32>
    %c0_11 = arith.constant 0 : index
    %c0_12 = arith.constant 0 : index
    %16 = vector.load %arg6[%c0_11, %c0_12] : memref<4x4xf32, #tpu.memory_space<vmem>>, vector<4x4xf32>
    %cst_13 = arith.constant dense<0.000000e+00> : vector<1x4xf32>
    %17 = tpu.matmul %13, %16, %cst_13 {dimension_numbers = #tpu.dot_dimension_numbers<[1], [0], [0], [1], [0, 0, 1, 1], [], []>} : vector<1x4xf32>, vector<4x4xf32>, vector<1x4xf32> -> vector<1x4xf32>
    %18 = arith.mulf %15, %15 : vector<1x4xf32>
    %19 = arith.subf %17, %18 : vector<1x4xf32>
    %cst_14 = arith.constant 0.000000e+00 : f32
    %20 = vector.broadcast %cst_14 : f32 to vector<1x4xf32>
    %21 = arith.maximumf %19, %20 : vector<1x4xf32>
    %c0_15 = arith.constant 0 : index
    %c0_16 = arith.constant 0 : index
    %22 = vector.load %arg4[%c0_15, %c0_16] : memref<1x4xf32, #tpu.memory_space<vmem>>, vector<1x4xf32>
    %cst_17 = arith.constant 9.99999974E-6 : f32
    %23 = vector.broadcast %cst_17 : f32 to vector<1x4xf32>
    %24 = arith.addf %21, %23 : vector<1x4xf32>
    %25 = math.rsqrt %24 : vector<1x4xf32>
    %26 = arith.mulf %22, %25 : vector<1x4xf32>
    %c0_18 = arith.constant 0 : index
    %c0_19 = arith.constant 0 : index
    %27 = vector.load %arg5[%c0_18, %c0_19] : memref<1x4xf32, #tpu.memory_space<vmem>>, vector<1x4xf32>
    %28 = arith.mulf %15, %26 : vector<1x4xf32>
    %29 = arith.subf %27, %28 : vector<1x4xf32>
    %30 = vector.broadcast %26 : vector<1x4xf32> to vector<144x4xf32>
    %31 = arith.mulf %8, %30 : vector<144x4xf32>
    %32 = vector.broadcast %29 : vector<1x4xf32> to vector<144x4xf32>
    %33 = arith.addf %31, %32 : vector<144x4xf32>
    %cst_20 = arith.constant 0.000000e+00 : f32
    %34 = vector.broadcast %cst_20 : f32 to vector<144x4xf32>
    %35 = arith.maximumf %33, %34 : vector<144x4xf32>
    %c0_21 = arith.constant 0 : index
    %c0_22 = arith.constant 0 : index
    %c0_23 = arith.constant 0 : index
    %36 = vector.load %arg7[%c0_21, %c0_22, %c0_23] : memref<1x144x4xf32, #tpu.memory_space<vmem>>, vector<1x144x4xf32>
    %37 = vector.shape_cast %36 : vector<1x144x4xf32> to vector<144x4xf32>
    %38 = vector.shape_cast %35 : vector<144x4xf32> to vector<1x144x4xf32>
    tpu.vector_store %arg7[%c0_21, %c0_22, %c0_23], %38 {strides = array<i32>} : memref<1x144x4xf32, #tpu.memory_space<vmem>>, vector<1x144x4xf32>,
    return
  }
  func.func @transform_0(%arg0: i32) -> (i32, i32, i32) {
    %c0_i32 = arith.constant 0 : i32
    %c0_i32_0 = arith.constant 0 : i32
    %c0_i32_1 = arith.constant 0 : i32
    return %arg0, %c0_i32, %c0_i32_0 : i32, i32, i32
  }
  func.func @transform_1(%arg0: i32) -> (i32, i32) {
    %c0_i32 = arith.constant 0 : i32
    %c0_i32_0 = arith.constant 0 : i32
    %c0_i32_1 = arith.constant 0 : i32
    return %c0_i32, %c0_i32_0 : i32, i32
  }
  func.func @transform_2(%arg0: i32) -> (i32, i32) {
    %c0_i32 = arith.constant 0 : i32
    %c0_i32_0 = arith.constant 0 : i32
    %c0_i32_1 = arith.constant 0 : i32
    return %c0_i32, %c0_i32_0 : i32, i32
  }
  func.func @transform_3(%arg0: i32) -> (i32, i32) {
    %c0_i32 = arith.constant 0 : i32
    %c0_i32_0 = arith.constant 0 : i32
    %c0_i32_1 = arith.constant 0 : i32
    return %c0_i32, %c0_i32_0 : i32, i32
  }
  func.func @transform_4(%arg0: i32) -> (i32, i32) {
    %c0_i32 = arith.constant 0 : i32
    %c0_i32_0 = arith.constant 0 : i32
    %c0_i32_1 = arith.constant 0 : i32
    return %c0_i32, %c0_i32_0 : i32, i32
  }
  func.func @transform_5(%arg0: i32) -> (i32, i32) {
    %c0_i32 = arith.constant 0 : i32
    %c0_i32_0 = arith.constant 0 : i32
    %c0_i32_1 = arith.constant 0 : i32
    return %c0_i32, %c0_i32_0 : i32, i32
  }
  func.func @transform_6(%arg0: i32) -> (i32, i32, i32) {
    %c0_i32 = arith.constant 0 : i32
    %c0_i32_0 = arith.constant 0 : i32
    %c0_i32_1 = arith.constant 0 : i32
    return %arg0, %c0_i32, %c0_i32_0 : i32, i32, i32
  }
}

module attributes {stable_mosaic.version = 11 : i64} {
  func.func @_fused_convblock_kernel(%arg0: i32, %arg1: memref<1x80x8xf32, #tpu.memory_space<vmem>>, %arg2: memref<8x8xf32, #tpu.memory_space<vmem>>, %arg3: memref<1x8xf32, #tpu.memory_space<vmem>>, %arg4: memref<1x8xf32, #tpu.memory_space<vmem>>, %arg5: memref<1x8xf32, #tpu.memory_space<vmem>>, %arg6: memref<8x8xf32, #tpu.memory_space<vmem>>, %arg7: memref<1x80x8xf32, #tpu.memory_space<vmem>>) attributes {dimension_semantics = [#tpu.dimension_semantics<parallel>], iteration_bounds = array<i64: 4>, scalar_prefetch = 0 : i64, scratch_operands = 0 : i64, tpu.core_type = #tpu.core_type<tc>, window_params = [{transform_indices = @transform_0, window_bounds = array<i64: 1, 80, 8>}, {pipeline_mode = #tpu.pipeline_mode<synchronous>, transform_indices = @transform_1, window_bounds = array<i64: 8, 8>}, {pipeline_mode = #tpu.pipeline_mode<synchronous>, transform_indices = @transform_2, window_bounds = array<i64: 1, 8>}, {pipeline_mode = #tpu.pipeline_mode<synchronous>, transform_indices = @transform_3, window_bounds = array<i64: 1, 8>}, {pipeline_mode = #tpu.pipeline_mode<synchronous>, transform_indices = @transform_4, window_bounds = array<i64: 1, 8>}, {pipeline_mode = #tpu.pipeline_mode<synchronous>, transform_indices = @transform_5, window_bounds = array<i64: 8, 8>}, {transform_indices = @transform_6, window_bounds = array<i64: 1, 80, 8>}]} {
    %c0 = arith.constant 0 : index
    %c0_0 = arith.constant 0 : index
    %c0_1 = arith.constant 0 : index
    %0 = vector.load %arg1[%c0, %c0_0, %c0_1] : memref<1x80x8xf32, #tpu.memory_space<vmem>>, vector<1x80x8xf32>
    %1 = vector.shape_cast %0 : vector<1x80x8xf32> to vector<80x8xf32>
    %2 = arith.truncf %1 : vector<80x8xf32> to vector<80x8xbf16>
    %c0_2 = arith.constant 0 : index
    %c0_3 = arith.constant 0 : index
    %3 = vector.load %arg2[%c0_2, %c0_3] : memref<8x8xf32, #tpu.memory_space<vmem>>, vector<8x8xf32>
    %4 = arith.truncf %3 : vector<8x8xf32> to vector<8x8xbf16>
    %cst = arith.constant dense<0.000000e+00> : vector<80x8xf32>
    %5 = tpu.matmul %2, %4, %cst {dimension_numbers = #tpu.dot_dimension_numbers<[1], [0], [0], [1], [0, 0, 1, 1], [], []>} : vector<80x8xbf16>, vector<8x8xbf16>, vector<80x8xf32> -> vector<80x8xf32>
    %c0_4 = arith.constant 0 : index
    %c0_5 = arith.constant 0 : index
    %6 = vector.load %arg3[%c0_4, %c0_5] : memref<1x8xf32, #tpu.memory_space<vmem>>, vector<1x8xf32>
    %7 = vector.broadcast %6 : vector<1x8xf32> to vector<80x8xf32>
    %8 = arith.addf %5, %7 : vector<80x8xf32>
    %cst_6 = arith.constant dense<0.000000e+00> : vector<8xf32>
    %9 = vector.multi_reduction <add>, %8, %cst_6 [0] : vector<80x8xf32> to vector<8xf32>
    %10 = vector.shape_cast %9 : vector<8xf32> to vector<1x8xf32>
    %11 = arith.mulf %8, %8 : vector<80x8xf32>
    %cst_7 = arith.constant dense<0.000000e+00> : vector<8xf32>
    %12 = vector.multi_reduction <add>, %11, %cst_7 [0] : vector<80x8xf32> to vector<8xf32>
    %13 = vector.shape_cast %12 : vector<8xf32> to vector<1x8xf32>
    %c0_8 = arith.constant 0 : index
    %c0_9 = arith.constant 0 : index
    %14 = vector.load %arg6[%c0_8, %c0_9] : memref<8x8xf32, #tpu.memory_space<vmem>>, vector<8x8xf32>
    %cst_10 = arith.constant dense<0.000000e+00> : vector<1x8xf32>
    %15 = tpu.matmul %10, %14, %cst_10 {dimension_numbers = #tpu.dot_dimension_numbers<[1], [0], [0], [1], [0, 0, 1, 1], [], []>} : vector<1x8xf32>, vector<8x8xf32>, vector<1x8xf32> -> vector<1x8xf32>
    %c0_11 = arith.constant 0 : index
    %c0_12 = arith.constant 0 : index
    %16 = vector.load %arg6[%c0_11, %c0_12] : memref<8x8xf32, #tpu.memory_space<vmem>>, vector<8x8xf32>
    %cst_13 = arith.constant dense<0.000000e+00> : vector<1x8xf32>
    %17 = tpu.matmul %13, %16, %cst_13 {dimension_numbers = #tpu.dot_dimension_numbers<[1], [0], [0], [1], [0, 0, 1, 1], [], []>} : vector<1x8xf32>, vector<8x8xf32>, vector<1x8xf32> -> vector<1x8xf32>
    %18 = arith.mulf %15, %15 : vector<1x8xf32>
    %19 = arith.subf %17, %18 : vector<1x8xf32>
    %cst_14 = arith.constant 0.000000e+00 : f32
    %20 = vector.broadcast %cst_14 : f32 to vector<1x8xf32>
    %21 = arith.maximumf %19, %20 : vector<1x8xf32>
    %c0_15 = arith.constant 0 : index
    %c0_16 = arith.constant 0 : index
    %22 = vector.load %arg4[%c0_15, %c0_16] : memref<1x8xf32, #tpu.memory_space<vmem>>, vector<1x8xf32>
    %cst_17 = arith.constant 9.99999974E-6 : f32
    %23 = vector.broadcast %cst_17 : f32 to vector<1x8xf32>
    %24 = arith.addf %21, %23 : vector<1x8xf32>
    %25 = math.rsqrt %24 : vector<1x8xf32>
    %26 = arith.mulf %22, %25 : vector<1x8xf32>
    %c0_18 = arith.constant 0 : index
    %c0_19 = arith.constant 0 : index
    %27 = vector.load %arg5[%c0_18, %c0_19] : memref<1x8xf32, #tpu.memory_space<vmem>>, vector<1x8xf32>
    %28 = arith.mulf %15, %26 : vector<1x8xf32>
    %29 = arith.subf %27, %28 : vector<1x8xf32>
    %30 = vector.broadcast %26 : vector<1x8xf32> to vector<80x8xf32>
    %31 = arith.mulf %8, %30 : vector<80x8xf32>
    %32 = vector.broadcast %29 : vector<1x8xf32> to vector<80x8xf32>
    %33 = arith.addf %31, %32 : vector<80x8xf32>
    %cst_20 = arith.constant 0.000000e+00 : f32
    %34 = vector.broadcast %cst_20 : f32 to vector<80x8xf32>
    %35 = arith.maximumf %33, %34 : vector<80x8xf32>
    %c0_21 = arith.constant 0 : index
    %c0_22 = arith.constant 0 : index
    %c0_23 = arith.constant 0 : index
    %36 = vector.load %arg7[%c0_21, %c0_22, %c0_23] : memref<1x80x8xf32, #tpu.memory_space<vmem>>, vector<1x80x8xf32>
    %37 = vector.shape_cast %36 : vector<1x80x8xf32> to vector<80x8xf32>
    %38 = vector.shape_cast %35 : vector<80x8xf32> to vector<1x80x8xf32>
    tpu.vector_store %arg7[%c0_21, %c0_22, %c0_23], %38 {strides = array<i32>} : memref<1x80x8xf32, #tpu.memory_space<vmem>>, vector<1x80x8xf32>,
    return
  }
  func.func @transform_0(%arg0: i32) -> (i32, i32, i32) {
    %c0_i32 = arith.constant 0 : i32
    %c0_i32_0 = arith.constant 0 : i32
    %c0_i32_1 = arith.constant 0 : i32
    return %arg0, %c0_i32, %c0_i32_0 : i32, i32, i32
  }
  func.func @transform_1(%arg0: i32) -> (i32, i32) {
    %c0_i32 = arith.constant 0 : i32
    %c0_i32_0 = arith.constant 0 : i32
    %c0_i32_1 = arith.constant 0 : i32
    return %c0_i32, %c0_i32_0 : i32, i32
  }
  func.func @transform_2(%arg0: i32) -> (i32, i32) {
    %c0_i32 = arith.constant 0 : i32
    %c0_i32_0 = arith.constant 0 : i32
    %c0_i32_1 = arith.constant 0 : i32
    return %c0_i32, %c0_i32_0 : i32, i32
  }
  func.func @transform_3(%arg0: i32) -> (i32, i32) {
    %c0_i32 = arith.constant 0 : i32
    %c0_i32_0 = arith.constant 0 : i32
    %c0_i32_1 = arith.constant 0 : i32
    return %c0_i32, %c0_i32_0 : i32, i32
  }
  func.func @transform_4(%arg0: i32) -> (i32, i32) {
    %c0_i32 = arith.constant 0 : i32
    %c0_i32_0 = arith.constant 0 : i32
    %c0_i32_1 = arith.constant 0 : i32
    return %c0_i32, %c0_i32_0 : i32, i32
  }
  func.func @transform_5(%arg0: i32) -> (i32, i32) {
    %c0_i32 = arith.constant 0 : i32
    %c0_i32_0 = arith.constant 0 : i32
    %c0_i32_1 = arith.constant 0 : i32
    return %c0_i32, %c0_i32_0 : i32, i32
  }
  func.func @transform_6(%arg0: i32) -> (i32, i32, i32) {
    %c0_i32 = arith.constant 0 : i32
    %c0_i32_0 = arith.constant 0 : i32
    %c0_i32_1 = arith.constant 0 : i32
    return %arg0, %c0_i32, %c0_i32_0 : i32, i32, i32
  }
}

module attributes {stable_mosaic.version = 11 : i64} {
  func.func @_residual_conv_kernel(%arg0: i32, %arg1: i32, %arg2: memref<1x144x4xf32, #tpu.memory_space<vmem>>, %arg3: memref<1x144x4xf32, #tpu.memory_space<vmem>>, %arg4: memref<4x4xf32, #tpu.memory_space<vmem>>, %arg5: memref<1x4xf32, #tpu.memory_space<vmem>>, %arg6: memref<1x144x4xf32, #tpu.memory_space<vmem>>) attributes {dimension_semantics = [#tpu.dimension_semantics<parallel>, #tpu.dimension_semantics<parallel>], iteration_bounds = array<i64: 2, 1>, scalar_prefetch = 0 : i64, scratch_operands = 0 : i64, tpu.core_type = #tpu.core_type<tc>, window_params = [{transform_indices = @transform_0, window_bounds = array<i64: 1, 144, 4>}, {transform_indices = @transform_1, window_bounds = array<i64: 1, 144, 4>}, {pipeline_mode = #tpu.pipeline_mode<synchronous>, transform_indices = @transform_2, window_bounds = array<i64: 4, 4>}, {pipeline_mode = #tpu.pipeline_mode<synchronous>, transform_indices = @transform_3, window_bounds = array<i64: 1, 4>}, {transform_indices = @transform_4, window_bounds = array<i64: 1, 144, 4>}]} {
    %c0 = arith.constant 0 : index
    %c0_0 = arith.constant 0 : index
    %c0_1 = arith.constant 0 : index
    %0 = vector.load %arg2[%c0, %c0_0, %c0_1] : memref<1x144x4xf32, #tpu.memory_space<vmem>>, vector<1x144x4xf32>
    %1 = vector.shape_cast %0 : vector<1x144x4xf32> to vector<144x4xf32>
    %c0_2 = arith.constant 0 : index
    %c0_3 = arith.constant 0 : index
    %c0_4 = arith.constant 0 : index
    %2 = vector.load %arg3[%c0_2, %c0_3, %c0_4] : memref<1x144x4xf32, #tpu.memory_space<vmem>>, vector<1x144x4xf32>
    %3 = vector.shape_cast %2 : vector<1x144x4xf32> to vector<144x4xf32>
    %4 = arith.addf %1, %3 : vector<144x4xf32>
    %5 = arith.truncf %4 : vector<144x4xf32> to vector<144x4xbf16>
    %c0_5 = arith.constant 0 : index
    %c0_6 = arith.constant 0 : index
    %6 = vector.load %arg4[%c0_5, %c0_6] : memref<4x4xf32, #tpu.memory_space<vmem>>, vector<4x4xf32>
    %7 = arith.truncf %6 : vector<4x4xf32> to vector<4x4xbf16>
    %cst = arith.constant dense<0.000000e+00> : vector<144x4xf32>
    %8 = tpu.matmul %5, %7, %cst {dimension_numbers = #tpu.dot_dimension_numbers<[1], [0], [0], [1], [0, 0, 1, 1], [], []>} : vector<144x4xbf16>, vector<4x4xbf16>, vector<144x4xf32> -> vector<144x4xf32>
    %c0_7 = arith.constant 0 : index
    %c0_8 = arith.constant 0 : index
    %9 = vector.load %arg5[%c0_7, %c0_8] : memref<1x4xf32, #tpu.memory_space<vmem>>, vector<1x4xf32>
    %10 = vector.broadcast %9 : vector<1x4xf32> to vector<144x4xf32>
    %11 = arith.addf %8, %10 : vector<144x4xf32>
    %c0_9 = arith.constant 0 : index
    %c0_10 = arith.constant 0 : index
    %c0_11 = arith.constant 0 : index
    %12 = vector.load %arg6[%c0_9, %c0_10, %c0_11] : memref<1x144x4xf32, #tpu.memory_space<vmem>>, vector<1x144x4xf32>
    %13 = vector.shape_cast %12 : vector<1x144x4xf32> to vector<144x4xf32>
    %14 = vector.shape_cast %11 : vector<144x4xf32> to vector<1x144x4xf32>
    tpu.vector_store %arg6[%c0_9, %c0_10, %c0_11], %14 {strides = array<i32>} : memref<1x144x4xf32, #tpu.memory_space<vmem>>, vector<1x144x4xf32>,
    return
  }
  func.func @transform_0(%arg0: i32, %arg1: i32) -> (i32, i32, i32) {
    %c0_i32 = arith.constant 0 : i32
    %c0_i32_0 = arith.constant 0 : i32
    return %arg0, %arg1, %c0_i32 : i32, i32, i32
  }
  func.func @transform_1(%arg0: i32, %arg1: i32) -> (i32, i32, i32) {
    %c0_i32 = arith.constant 0 : i32
    %c0_i32_0 = arith.constant 0 : i32
    return %arg0, %arg1, %c0_i32 : i32, i32, i32
  }
  func.func @transform_2(%arg0: i32, %arg1: i32) -> (i32, i32) {
    %c0_i32 = arith.constant 0 : i32
    %c0_i32_0 = arith.constant 0 : i32
    %c0_i32_1 = arith.constant 0 : i32
    return %c0_i32, %c0_i32_0 : i32, i32
  }
  func.func @transform_3(%arg0: i32, %arg1: i32) -> (i32, i32) {
    %c0_i32 = arith.constant 0 : i32
    %c0_i32_0 = arith.constant 0 : i32
    %c0_i32_1 = arith.constant 0 : i32
    return %c0_i32, %c0_i32_0 : i32, i32
  }
  func.func @transform_4(%arg0: i32, %arg1: i32) -> (i32, i32, i32) {
    %c0_i32 = arith.constant 0 : i32
    %c0_i32_0 = arith.constant 0 : i32
    return %arg0, %arg1, %c0_i32 : i32, i32, i32
  }
}

</mosaic_0001>

<bundles_post_ra>
// kernel: spectral_transform.3
= control target key start
LH: loop header
LB: loop body
LE: loop exit
PB: predicated region body
PF: predicated region fallthrough
CT: control target
= control target key end

     0   :  { %s971_s21 = smov 0   ;;  %s1293_s0 = inlined_call_operand.vmem [shape: f32[2,144,4], index: 0, kind: input, shape index: {}]   ;;  %s1294_s1 = inlined_call_operand.vmem [shape: f32[4,4], index: 1, kind: input, shape index: {}]   ;;  %s1295_s2 = inlined_call_operand.vmem [shape: f32[1,4], index: 2, kind: input, shape index: {}]   ;;  %s1296_s3 = inlined_call_operand.vmem [shape: f32[1,4], index: 3, kind: input, shape index: {}]   ;;  %s1297_s4 = inlined_call_operand.vmem [shape: f32[1,4], index: 4, kind: input, shape index: {}]   ;;  %s1298_s5 = inlined_call_operand.vmem [shape: f32[4,4], index: 5, kind: input, shape index: {}]   ;;  %s1299_s6 = inlined_call_operand.vmem [shape: f32[2,144,4], index: 6, kind: output, shape index: {}]  }
   0x1 LB: > { %s826_s22 = sadd.s32 4294967295, %s932_s21   ;;  %p830_p0 = scmp.ge.s32.totalorder %s932_s21, 1  ;;  %s932_s21 = sphi %s971_s21, %s16_s21  }
   0x2   : > { %p212_p1 = scmp.lt.s32.totalorder %s932_s21, 3 }
   0x4   : > { %p213_p2 = pnand %p830_p0, %p212_p1 }
   0x5   : > { %v280_v0 = vld [vmem:[%s1294_s1] sm:$0xf] (!%p213_p2)  ;;  %vm317_vm0 = vcmask (!%p213_p2), 1041408   ;;  %p242_p3 = scmp.lt.s32.totalorder (!%p213_p2), %s826_s22, 1  ;;  %v934_v1 = vmov (!%p213_p2), 0.0   ;;  %vm935_vm1 = vmmov (!%p213_p2), 0  }
   0x6   : > { %216 = sbr.rel (%p213_p2) target bundleno = 556 (0x22c), region = 44  ;;  %863 = vmatprep.subr.bf16.mxu0 (!%p213_p2), %v934_v1  ;;  %v281_v2 = vpack.c.bf16 (!%p213_p2), %v280_v0, %v280_v0  ;;  %865 = vmatprep.mubr.msk.bf16.mxu0 (!%p213_p2), %vm935_vm1, %v934_v1  ;;  %vm289_vm2 = vcmask (!%p213_p2), 31744   ;;  %v1045_v31 = vld [vmem:[%s1298_s5] sm:$0xf] (!%p213_p2)  ;;  %vm530_vm3 = vcmask (!%p213_p2), 1043456  }
   0x7   : > { %911 = vmatprep.subr.bf16.mxu1 (!%p213_p2), %v934_v1  ;;  %885 = vmatprep.mubr.msk.bf16.mxu1 (!%p213_p2), %vm935_vm1, %v934_v1  ;;  %v1057_v40 = vld [vmem:[%s1295_s2] ss:$0 sm:$0xff] (!%p213_p2) }
   0x8   : > { %v319_v3 = vsel (!%p213_p2), %vm317_vm0, %v281_v2, 0 }
   0x9   : > { %864 = vmatpush3.bf16.msra.mxu0 (!%p213_p2), %v319_v3  ;;  %912 = vmatpush3.bf16.msra.mxu1 (!%p213_p2), %v319_v3 }
   0xa   : > { %901 = vmatprep.subr.mxu1 (!%p213_p2), %v934_v1 }
   0xd   : > { %s1301_s22 = smov (!%p242_p3, %s826_s22), 1 }
   0xe   : > { %s913_s25 = smul.u32 144, %s1301_s22 }
  0x10   : > { %s997_s28 = scalar_lea.vmem %s1293_s0, %s913_s25  ;;  %s1252_s15 = scalar_lea.vmem %s1299_s6, %s913_s25 }
  0x11   : > { %v253_v4 = vld [vmem:[%s997_s28] sm:$0xff]  ;;  %v254_v5 = vld [vmem:[%s997_s28 + $0x8] sm:$0xff]  ;;  %v263_v7 = vld [vmem:[%s997_s28 + $0x50] sm:$0xff] }
  0x12   : > { %v271_v6 = vpack.c.bf16 %v254_v5, %v253_v4  ;;  %v264_v8 = vld [vmem:[%s997_s28 + $0x58] sm:$0xff]  ;;  %v255_v10 = vld [vmem:[%s997_s28 + $0x10] sm:$0xff]  ;;  %v265_v12 = vld [vmem:[%s997_s28 + $0x60] sm:$0xff] }
  0x13   : > { %v276_v9 = vpack.c.bf16 %v264_v8, %v263_v7  ;;  %v256_v11 = vld [vmem:[%s997_s28 + $0x18] sm:$0xff]  ;;  %v266_v13 = vld [vmem:[%s997_s28 + $0x68] sm:$0xff]  ;;  %v257_v16 = vld [vmem:[%s997_s28 + $0x20] sm:$0xff] }
  0x14   : > { %866 = vmatmul.mubr.msk.bf16.vlgmr.msra.gmra.mrb[0].mxu0 %vm289_vm2, %v271_v6  ;;  %v272_v14 = vpack.c.bf16 %v256_v11, %v255_v10  ;;  %v277_v15 = vpack.c.bf16 %v266_v13, %v265_v12  ;;  %v258_v17 = vld [vmem:[%s997_s28 + $0x28] sm:$0xff]  ;;  %v267_v18 = vld [vmem:[%s997_s28 + $0x70] sm:$0xff]  ;;  %v268_v19 = vld [vmem:[%s997_s28 + $0x78] sm:$0xff] }
  0x15   : > { %869 = vmatprep.mubr.msk.bf16.mxu0 %vm935_vm1, %v934_v1  ;;  %886 = vmatmul.mubr.msk.bf16.vlgmr.msra.gmra.mrb[0].mxu1 %vm289_vm2, %v276_v9  ;;  %v273_v20 = vpack.c.bf16 %v258_v17, %v257_v16  ;;  %v278_v21 = vpack.c.bf16 %v268_v19, %v267_v18  ;;  %v259_v22 = vld [vmem:[%s997_s28 + $0x30] sm:$0xff]  ;;  %v260_v23 = vld [vmem:[%s997_s28 + $0x38] sm:$0xff]  ;;  %v269_v24 = vld [vmem:[%s997_s28 + $0x80] sm:$0xff] }
  0x16   : > { %889 = vmatprep.mubr.msk.bf16.mxu1 %vm935_vm1, %v934_v1  ;;  %v270_v25 = vld [vmem:[%s997_s28 + $0x88] sm:$0xff]  ;;  %v274_v26 = vpack.c.bf16 %v260_v23, %v259_v22  ;;  %v261_v28 = vld [vmem:[%s997_s28 + $0x40] sm:$0xff]  ;;  %902 = vmatpush3.msk.msra.mxu1 %vm530_vm3, %v1045_v31 }
  0x17   : > { %v279_v27 = vpack.c.bf16 %v270_v25, %v269_v24  ;;  %v262_v29 = vld [vmem:[%s997_s28 + $0x48] sm:$0xff]  ;;  %906 = vmatprep.subr.mxu1 %v934_v1 }
  0x18   : > { %v275_v30 = vpack.c.bf16 %v262_v29, %v261_v28 }
  0x1c   : > { %870 = vmatmul.mubr.msk.bf16.gmra.mrb[4].mxu0 %vm289_vm2, %v272_v14 }
  0x1d   : > { %873 = vmatprep.mubr.msk.bf16.mxu0 %vm935_vm1, %v934_v1  ;;  %890 = vmatmul.mubr.msk.bf16.gmra.mrb[4].mxu1 %vm289_vm2, %v277_v15 }
  0x1e   : > { %893 = vmatprep.mubr.msk.bf16.mxu1 %vm935_vm1, %v934_v1 }
  0x24   : > { %874 = vmatmul.mubr.msk.bf16.gmra.mrb[8].mxu0 %vm289_vm2, %v273_v20 }
  0x25   : > { %877 = vmatprep.mubr.msk.bf16.mxu0 %vm935_vm1, %v934_v1  ;;  %894 = vmatmul.mubr.msk.bf16.gmra.mrb[8].mxu1 %vm289_vm2, %v278_v21 }
  0x26   : > { %897 = vmatprep.mubr.msk.bf16.mxu1 %vm935_vm1, %v934_v1 }
  0x2c   : > { %878 = vmatmul.mubr.msk.bf16.gmra.mrb[12].mxu0 %vm289_vm2, %v274_v26 }
  0x2d   : > { %881 = vmatprep.mubr.msk.bf16.mxu0 %vm935_vm1, %v934_v1  ;;  %898 = vmatmul.mubr.msk.bf16.gmra.mrb[12].mxu1 %vm289_vm2, %v279_v27 }
  0x2e   : > { %903 = vmatprep.mubr.msk.f32.mxu1 %vm935_vm1, %v934_v1 }
  0x34   : > { %882 = vmatmul.mubr.msk.bf16.gmra.mrb[16].mxu0 %vm289_vm2, %v275_v30 }
  0xe7   : > { %v355_v32 = vpop.f32.mrb[0].mxu0 }
  0xe8   : > { %v867_v33 = vpop.f32.mrb[1].mxu0  ;;  %v1050_v35 = vpop.f32.mrb[0].mxu1  ;;  %v1063_v43 = vadd.f32 %v1057_v40, %v355_v32 }
  0xe9   : > { %v358_v34 = vpop.f32.mrb[2].mxu0  ;;  %v887_v37 = vpop.f32.mrb[1].mxu1 }
  0xea   : > { %v868_v36 = vpop.f32.mrb[3].mxu0  ;;  %v1052_v38 = vpop.f32.mrb[2].mxu1  ;;  %v1060_v41 = vadd.f32 %v1057_v40, %v358_v34  ;;  %v467_v52 = vmul.f32 %v1063_v43, %v1063_v43  ;;  %v426_v57 = vsel %vm289_vm2, %v1063_v43, 0.0 }
  0xeb   : > { %v888_v39 = vpop.f32.mrb[3].mxu1 }
  0xec   : > { %v468_v48 = vmul.f32 %v1060_v41, %v1060_v41  ;;  %v427_v53 = vsel %vm289_vm2, %v1060_v41, 0.0  ;;  %v485_v62 = vsel %vm289_vm2, %v467_v52, 0.0 }
  0xed   : > { %v428_v60 = vadd.f32 %v427_v53, %v426_v57  ;;  %v1132_v53 = vadd.f32 %v1057_v40, %v1050_v35 }
  0xee   : > { %v486_v58 = vsel %vm289_vm2, %v468_v48, 0.0 }
  0xef   : > { %v363_v42 = vpop.f32.mrb[4].mxu0  ;;  %v487_v4 = vadd.f32 %v486_v58, %v485_v62  ;;  %v1140_v62 = vadd.f32 %v1057_v40, %v1052_v38 }
  0xf0   : > { %v1066_v44 = vadd.f32 %v1057_v40, %v363_v42  ;;  %v871_v45 = vpop.f32.mrb[5].mxu0  ;;  %v1068_v47 = vpop.f32.mrb[4].mxu1 }
  0xf1   : > { %v366_v46 = vpop.f32.mrb[6].mxu0  ;;  %v891_v50 = vpop.f32.mrb[5].mxu1 }
  0xf2   : > { %v872_v49 = vpop.f32.mrb[7].mxu0  ;;  %v1072_v51 = vpop.f32.mrb[6].mxu1  ;;  %v469_v54 = vmul.f32 %v1066_v44, %v1066_v44  ;;  %v1081_v55 = vadd.f32 %v1057_v40, %v366_v46  ;;  %v429_v59 = vsel %vm289_vm2, %v1066_v44, 0.0 }
  0xf3   : > { %v892_v56 = vpop.f32.mrb[7].mxu1  ;;  %v430_v5 = vadd.f32 %v429_v59, %v428_v60 }
  0xf4   : > { %v488_v63 = vsel %vm289_vm2, %v469_v54, 0.0  ;;  %v470_v0 = vmul.f32 %v1081_v55, %v1081_v55  ;;  %v431_v8 = vsel %vm289_vm2, %v1081_v55, 0.0 }
  0xf5   : > { %v489_v13 = vadd.f32 %v488_v63, %v487_v4  ;;  %v432_v18 = vadd.f32 %v431_v8, %v430_v5  ;;  %v477_v4 = vmul.f32 %v1132_v53, %v1132_v53  ;;  %v1153_v8 = vadd.f32 %v1057_v40, %v1068_v47 }
  0xf6   : > { %v490_v15 = vsel %vm289_vm2, %v470_v0, 0.0  ;;  %v478_v47 = vmul.f32 %v1140_v62, %v1140_v62 }
  0xf7   : > { %v371_v61 = vpop.f32.mrb[8].mxu0  ;;  %v491_v21 = vadd.f32 %v490_v15, %v489_v13 }
  0xf8   : > { %v1093_v2 = vadd.f32 %v1057_v40, %v371_v61  ;;  %v875_v3 = vpop.f32.mrb[9].mxu0  ;;  %v1095_v7 = vpop.f32.mrb[8].mxu1 }
  0xf9   : > { %v374_v6 = vpop.f32.mrb[10].mxu0  ;;  %v895_v12 = vpop.f32.mrb[9].mxu1 }
  0xfa   : > { %v471_v9 = vmul.f32 %v1093_v2, %v1093_v2  ;;  %v1102_v10 = vadd.f32 %v1057_v40, %v374_v6  ;;  %v876_v11 = vpop.f32.mrb[11].mxu0  ;;  %v1104_v14 = vpop.f32.mrb[10].mxu1  ;;  %v433_v16 = vsel %vm289_vm2, %v1093_v2, 0.0  ;;  %v1162_v12 = vadd.f32 %v1057_v40, %v1072_v51 }
  0xfb   : > { %v896_v17 = vpop.f32.mrb[11].mxu1  ;;  %v434_v22 = vadd.f32 %v433_v16, %v432_v18  ;;  %v445_v16 = vsel %vm289_vm2, %v1132_v53, 0.0  ;;  %v479_v51 = vmul.f32 %v1153_v8, %v1153_v8 }
  0xfc   : > { %v492_v19 = vsel %vm289_vm2, %v471_v9, 0.0  ;;  %v472_v20 = vmul.f32 %v1102_v10, %v1102_v10  ;;  %v435_v24 = vsel %vm289_vm2, %v1102_v10, 0.0 }
  0xfd   : > { %v493_v27 = vadd.f32 %v492_v19, %v491_v21  ;;  %v436_v39 = vadd.f32 %v435_v24, %v434_v22  ;;  %v447_v21 = vsel %vm289_vm2, %v1140_v62, 0.0  ;;  %v1176_v22 = vadd.f32 %v1057_v40, %v1095_v7 }
  0xfe   : > { %v494_v30 = vsel %vm289_vm2, %v472_v20, 0.0  ;;  %v504_v20 = vsel %vm289_vm2, %v477_v4, 0.0 }
  0xff   : > { %v379_v23 = vpop.f32.mrb[12].mxu0  ;;  %v495_v49 = vadd.f32 %v494_v30, %v493_v27  ;;  %v506_v27 = vsel %vm289_vm2, %v478_v47, 0.0  ;;  %v1185_v30 = vadd.f32 %v1057_v40, %v1104_v14  ;;  %v453_v14 = vsel %vm289_vm2, %v1176_v22, 0.0 }
 0x100   : > { %v1115_v25 = vadd.f32 %v1057_v40, %v379_v23  ;;  %v879_v26 = vpop.f32.mrb[13].mxu0  ;;  %v419_v29 = vpop.f32.mrb[12].mxu1  ;;  %v480_v23 = vmul.f32 %v1162_v12, %v1162_v12 }
 0x101   : > { %v382_v28 = vpop.f32.mrb[14].mxu0  ;;  %v899_v37 = vpop.f32.mrb[13].mxu1 }
 0x102   : > { %v437_v32 = vsel %vm289_vm2, %v1115_v25, 0.0  ;;  %v473_v33 = vmul.f32 %v1115_v25, %v1115_v25  ;;  %v1123_v34 = vadd.f32 %v1057_v40, %v382_v28  ;;  %v880_v36 = vpop.f32.mrb[15].mxu0  ;;  %v422_v42 = vpop.f32.mrb[14].mxu1  ;;  %v449_v28 = vsel %vm289_vm2, %v1153_v8, 0.0 }
 0x103   : > { %v900_v48 = vpop.f32.mrb[15].mxu1  ;;  %v438_v50 = vadd.f32 %v437_v32, %v436_v39  ;;  %v1188_v32 = vadd.f32 %v1057_v40, %v419_v29  ;;  %v508_v36 = vsel %vm289_vm2, %v479_v51, 0.0  ;;  %v451_v37 = vsel %vm289_vm2, %v1162_v12, 0.0 }
 0x104   : > { %v496_v45 = vsel %vm289_vm2, %v473_v33, 0.0  ;;  %v474_v46 = vmul.f32 %v1123_v34, %v1123_v34  ;;  %v439_v52 = vsel %vm289_vm2, %v1123_v34, 0.0  ;;  %v481_v39 = vmul.f32 %v1176_v22, %v1176_v22 }
 0x105   : > { %v497_v54 = vadd.f32 %v496_v45, %v495_v49  ;;  %v440_v60 = vadd.f32 %v439_v52, %v438_v50  ;;  %v510_v45 = vsel %vm289_vm2, %v480_v23, 0.0  ;;  %v482_v29 = vmul.f32 %v1185_v30, %v1185_v30 }
 0x106   : > { %v498_v57 = vsel %vm289_vm2, %v474_v46, 0.0  ;;  %v483_v49 = vmul.f32 %v1188_v32, %v1188_v32  ;;  %v1203_v50 = vadd.f32 %v1057_v40, %v422_v42 }
 0x107   : > { %v387_v56 = vpop.f32.mrb[16].mxu0  ;;  %v499_v5 = vadd.f32 %v498_v57, %v497_v54  ;;  %v455_v57 = vsel %vm289_vm2, %v1185_v30, 0.0 }
 0x108   : > { %v1136_v58 = vadd.f32 %v1057_v40, %v387_v56  ;;  %v883_v59 = vpop.f32.mrb[17].mxu0  ;;  %v512_v56 = vsel %vm289_vm2, %v481_v39, 0.0  ;;  %v459_v4 = vsel %vm289_vm2, %v1203_v50, 0.0  ;;  %v688_v39 = vlaneseq }
 0x109   : > { %v390_v61 = vpop.f32.mrb[18].mxu0  ;;  %v457_v59 = vsel %vm289_vm2, %v1188_v32, 0.0 }
 0x10a   : > { %v441_v63 = vsel %vm289_vm2, %v1136_v58, 0.0  ;;  %v475_v35 = vmul.f32 %v1136_v58, %v1136_v58  ;;  %v1147_v0 = vadd.f32 %v1057_v40, %v390_v61  ;;  %v884_v3 = vpop.f32.mrb[19].mxu0  ;;  %v484_v40 = vmul.f32 %v1203_v50, %v1203_v50 }
 0x10b   : > { %v442_v6 = vadd.f32 %v441_v63, %v440_v60  ;;  %v514_v63 = vsel %vm289_vm2, %v482_v29, 0.0 }
 0x10c   : > { %v500_v38 = vsel %vm289_vm2, %v475_v35, 0.0  ;;  %v443_v9 = vsel %vm289_vm2, %v1147_v0, 0.0  ;;  %v476_v11 = vmul.f32 %v1147_v0, %v1147_v0  ;;  %v516_v35 = vsel %vm289_vm2, %v483_v49, 0.0 }
 0x10d   : > { %v501_v13 = vadd.f32 %v500_v38, %v499_v5  ;;  %v444_v15 = vadd.f32 %v443_v9, %v442_v6  ;;  %v518_v38 = vsel %vm289_vm2, %v484_v40, 0.0 }
 0x10e   : > { %v502_v17 = vsel %vm289_vm2, %v476_v11, 0.0 }
 0x10f   : > { %v446_v18 = vadd.f32 %v445_v16, %v444_v15  ;;  %v503_v19 = vadd.f32 %v502_v17, %v501_v13 }
 0x111   : > { %v448_v24 = vadd.f32 %v447_v21, %v446_v18  ;;  %v505_v26 = vadd.f32 %v504_v20, %v503_v19 }
 0x113   : > { %v507_v33 = vadd.f32 %v506_v27, %v505_v26  ;;  %v450_v7 = vadd.f32 %v449_v28, %v448_v24 }
 0x115   : > { %v452_v46 = vadd.f32 %v451_v37, %v450_v7  ;;  %v509_v48 = vadd.f32 %v508_v36, %v507_v33 }
 0x117   : > { %v454_v52 = vadd.f32 %v453_v14, %v452_v46  ;;  %v511_v54 = vadd.f32 %v510_v45, %v509_v48  ;;  %v689_v45 = vshrl.u32 %v688_v39, 7  ;;  %v684_v14 = vld [vmem:[%s1297_s4] sm:$0x1] }
 0x119   : > { %v513_v60 = vadd.f32 %v512_v56, %v511_v54  ;;  %v456_v61 = vadd.f32 %v455_v57, %v454_v52  ;;  %v690_v46 = vsub.s32 0, %v689_v45 }
 0x11b   : > { %v515_v42 = vadd.f32 %v514_v63, %v513_v60  ;;  %v458_v3 = vadd.f32 %v457_v59, %v456_v61 }
 0x11d   : > { %v517_v5 = vadd.f32 %v516_v35, %v515_v42  ;;  %v460_v6 = vadd.f32 %v459_v4, %v458_v3 }
 0x11f   : > { %v461_v9 = vrot.slane %v460_v6, 4  ;;  %v519_v11 = vadd.f32 %v518_v38, %v517_v5 }
 0x121   : > { %v462_v13 = vadd.f32 %v461_v9, %v460_v6  ;;  %v520_v15 = vrot.slane %v519_v11, 4 }
 0x123   : > { %v463_v16 = vrot.slane %v462_v13, 2  ;;  %v521_v47 = vadd.f32 %v520_v15, %v519_v11 }
 0x125   : > { %v464_v17 = vadd.f32 %v463_v16, %v462_v13  ;;  %v522_v18 = vrot.slane %v521_v47, 2 }
 0x127   : > { %v465_v19 = vrot.slane %v464_v17, 1  ;;  %v523_v20 = vadd.f32 %v522_v18, %v521_v47 }
 0x129   : > { %v466_v21 = vadd.f32 %v465_v19, %v464_v17  ;;  %v524_v51 = vrot.slane %v523_v20, 1 }
 0x12b   : > { %904 = vmatmul.mubr.msk.f32.vlgmr.msra.gmra.mrb[16].mxu1 %vm289_vm2, %v466_v21  ;;  %v525_v23 = vadd.f32 %v524_v51, %v523_v20 }
 0x12c   : > { %907 = vmatpush3.msk.msra.mxu1 %vm530_vm3, %v1045_v31  ;;  %908 = vmatprep.mubr.msk.f32.mxu1 %vm935_vm1, %v934_v1  ;;  %v680_v31 = vld [vmem:[%s1296_s3] sm:$0x1] }
 0x12f   : > { %909 = vmatmul.mubr.msk.f32.vlgmr.msra.gmra.mrb[18].mxu1 %vm289_vm2, %v525_v23 }
 0x1fe   : > { %v600_v24 = vpop.f32.mrb[16].mxu1 }
 0x1ff   : > { %v905_v26 = vpop.f32.mrb[17].mxu1  ;;  %v677_v27 = vmul.f32 %v600_v24, %v600_v24 }
 0x202   : > { %v673_v28 = vpop.f32.mrb[18].mxu1 }
 0x203   : > { %v678_v33 = vsub.f32 %v673_v28, %v677_v27  ;;  %v910_v7 = vpop.f32.mrb[19].mxu1 }
 0x205   : > { %v679_v36 = vmax.f32 %v678_v33, 0.0 }
 0x207   : > { %v681_v37 = vadd.f32 1e-05, %v679_v36 }
 0x209   : > { %924 = vrsqrt.f32 %v681_v37 }
 0x213   : > { %v925_v1 = vpop.eup %924 }
 0x214   : > { %v683_v48 = vmul.f32 %v925_v1, %v680_v31 }
 0x216   : > { %v685_v29 = vmul.f32 %v683_v48, %v600_v24  ;;  %v691_v49 = vrot.slane %v683_v48, %v690_v46 }
 0x218   : > { %v686_v52 = vsub.f32 %v684_v14, %v685_v29  ;;  %v693_v54 = vmul.f32 %v691_v49, %v1063_v43  ;;  %v694_v56 = vmul.f32 %v691_v49, %v1060_v41  ;;  %v695_v57 = vmul.f32 %v691_v49, %v1066_v44 }
 0x219   : > { %v696_v59 = vmul.f32 %v691_v49, %v1081_v55  ;;  %v697_v60 = vmul.f32 %v691_v49, %v1093_v2  ;;  %v698_v61 = vmul.f32 %v691_v49, %v1102_v10  ;;  %v699_v63 = vmul.f32 %v691_v49, %v1115_v25 }
 0x21a   : > { %v700_v35 = vmul.f32 %v691_v49, %v1123_v34  ;;  %v701_v40 = vmul.f32 %v691_v49, %v1136_v58  ;;  %v702_v42 = vmul.f32 %v691_v49, %v1147_v0  ;;  %v703_v43 = vmul.f32 %v691_v49, %v1132_v53 }
 0x21b   : > { %v704_v41 = vmul.f32 %v691_v49, %v1140_v62  ;;  %v705_v44 = vmul.f32 %v691_v49, %v1153_v8  ;;  %v706_v55 = vmul.f32 %v691_v49, %v1162_v12  ;;  %v715_v3 = vrot.slane %v686_v52, %v690_v46 }
 0x21c   : > { %v707_v2 = vmul.f32 %v691_v49, %v1176_v22  ;;  %v708_v10 = vmul.f32 %v691_v49, %v1185_v30  ;;  %v709_v25 = vmul.f32 %v691_v49, %v1188_v32  ;;  %v710_v34 = vmul.f32 %v691_v49, %v1203_v50 }
 0x21d   : > { %v717_v58 = vadd.f32 %v715_v3, %v693_v54  ;;  %v718_v0 = vadd.f32 %v715_v3, %v694_v56  ;;  %v719_v4 = vadd.f32 %v715_v3, %v695_v57  ;;  %v720_v53 = vadd.f32 %v715_v3, %v696_v59 }
 0x21e   : > { %v721_v5 = vadd.f32 %v715_v3, %v697_v60  ;;  %v722_v62 = vadd.f32 %v715_v3, %v698_v61  ;;  %v723_v6 = vadd.f32 %v715_v3, %v699_v63  ;;  %v724_v8 = vadd.f32 %v715_v3, %v700_v35 }
 0x21f   : > { %v725_v38 = vadd.f32 %v715_v3, %v701_v40  ;;  %v726_v12 = vadd.f32 %v715_v3, %v702_v42  ;;  %v727_v9 = vadd.f32 %v715_v3, %v703_v43  ;;  %v728_v11 = vadd.f32 %v715_v3, %v704_v41 }
 0x220   : > { %v729_v22 = vadd.f32 %v715_v3, %v705_v44  ;;  %v730_v30 = vadd.f32 %v715_v3, %v706_v55  ;;  %v731_v32 = vadd.f32 %v715_v3, %v707_v2  ;;  %v732_v50 = vadd.f32 %v715_v3, %v708_v10 }
 0x221   : > { %v733_v13 = vadd.f32 %v715_v3, %v709_v25  ;;  %v734_v15 = vadd.f32 %v715_v3, %v710_v34  ;;  %v735_v16 = vmax.f32 %v717_v58, 0.0  ;;  %v736_v47 = vmax.f32 %v718_v0, 0.0 }
 0x222   : > { %v737_v17 = vmax.f32 %v719_v4, 0.0  ;;  %v738_v18 = vmax.f32 %v720_v53, 0.0  ;;  %v739_v19 = vmax.f32 %v721_v5, 0.0  ;;  %v740_v20 = vmax.f32 %v722_v62, 0.0 }
 0x223   : > { %v741_v21 = vmax.f32 %v723_v6, 0.0  ;;  %v742_v51 = vmax.f32 %v724_v8, 0.0  ;;  %v743_v23 = vmax.f32 %v725_v38, 0.0  ;;  %v744_v24 = vmax.f32 %v726_v12, 0.0  ;;  %753 = vst.msk [vmem:[%s1252_s15] sm:$0xff] %vm289_vm2, %v735_v16  ;;  %754 = vst.msk [vmem:[%s1252_s15 + $0x8] sm:$0xff] %vm289_vm2, %v736_v47 }
 0x224   : > { %v745_v26 = vmax.f32 %v727_v9, 0.0  ;;  %v746_v27 = vmax.f32 %v728_v11, 0.0  ;;  %v747_v28 = vmax.f32 %v729_v22, 0.0  ;;  %v748_v33 = vmax.f32 %v730_v30, 0.0  ;;  %755 = vst.msk [vmem:[%s1252_s15 + $0x10] sm:$0xff] %vm289_vm2, %v737_v17  ;;  %756 = vst.msk [vmem:[%s1252_s15 + $0x18] sm:$0xff] %vm289_vm2, %v738_v18 }
 0x225   : > { %757 = vst.msk [vmem:[%s1252_s15 + $0x20] sm:$0xff] %vm289_vm2, %v739_v19  ;;  %758 = vst.msk [vmem:[%s1252_s15 + $0x28] sm:$0xff] %vm289_vm2, %v740_v20  ;;  %v749_v7 = vmax.f32 %v731_v32, 0.0  ;;  %v750_v36 = vmax.f32 %v732_v50, 0.0  ;;  %v751_v37 = vmax.f32 %v733_v13, 0.0  ;;  %v752_v39 = vmax.f32 %v734_v15, 0.0 }
 0x226   : > { %759 = vst.msk [vmem:[%s1252_s15 + $0x30] sm:$0xff] %vm289_vm2, %v741_v21  ;;  %760 = vst.msk [vmem:[%s1252_s15 + $0x38] sm:$0xff] %vm289_vm2, %v742_v51 }
 0x227   : > { %761 = vst.msk [vmem:[%s1252_s15 + $0x40] sm:$0xff] %vm289_vm2, %v743_v23  ;;  %762 = vst.msk [vmem:[%s1252_s15 + $0x48] sm:$0xff] %vm289_vm2, %v744_v24 }
 0x228   : > { %763 = vst.msk [vmem:[%s1252_s15 + $0x50] sm:$0xff] %vm289_vm2, %v745_v26  ;;  %764 = vst.msk [vmem:[%s1252_s15 + $0x58] sm:$0xff] %vm289_vm2, %v746_v27 }
 0x229   : > { %765 = vst.msk [vmem:[%s1252_s15 + $0x60] sm:$0xff] %vm289_vm2, %v747_v28  ;;  %766 = vst.msk [vmem:[%s1252_s15 + $0x68] sm:$0xff] %vm289_vm2, %v748_v33 }
 0x22a   : > { %767 = vst.msk [vmem:[%s1252_s15 + $0x70] sm:$0xff] %vm289_vm2, %v749_v7  ;;  %768 = vst.msk [vmem:[%s1252_s15 + $0x78] sm:$0xff] %vm289_vm2, %v750_v36 }
 0x22b   : > { %769 = vst.msk [vmem:[%s1252_s15 + $0x80] sm:$0xff] %vm289_vm2, %v751_v37  ;;  %770 = vst.msk [vmem:[%s1252_s15 + $0x88] sm:$0xff] %vm289_vm2, %v752_v39 }
 0x22c PF: > { %s16_s21 = sadd.s32 1, %s932_s21  }
 0x22d   : > { %p13_p4 = scmp.ge.s32.totalorder %s16_s21, 4  }
 0x22f   :  { %15 = sbr.rel (!%p13_p4) target bundleno = 1 (0x1), region = 74 }

// kernel: spectral_transform.4
= control target key start
LH: loop header
LB: loop body
LE: loop exit
PB: predicated region body
PF: predicated region fallthrough
CT: control target
= control target key end

     0   :  { %s813_s21 = smov 0   ;;  %s971_s0 = inlined_call_operand.vmem [shape: f32[4,80,8], index: 0, kind: input, shape index: {}]   ;;  %s972_s1 = inlined_call_operand.vmem [shape: f32[8,8], index: 1, kind: input, shape index: {}]   ;;  %s973_s2 = inlined_call_operand.vmem [shape: f32[1,8], index: 2, kind: input, shape index: {}]   ;;  %s974_s3 = inlined_call_operand.vmem [shape: f32[1,8], index: 3, kind: input, shape index: {}]   ;;  %s975_s4 = inlined_call_operand.vmem [shape: f32[1,8], index: 4, kind: input, shape index: {}]   ;;  %s976_s5 = inlined_call_operand.vmem [shape: f32[8,8], index: 5, kind: input, shape index: {}]   ;;  %s977_s6 = inlined_call_operand.vmem [shape: f32[4,80,8], index: 6, kind: output, shape index: {}]  }
   0x1 LB: > { %s694_s22 = sadd.s32 4294967295, %s774_s21   ;;  %p698_p0 = scmp.ge.s32.totalorder %s774_s21, 1  ;;  %s774_s21 = sphi %s813_s21, %s16_s21  }
   0x2   : > { %p212_p1 = scmp.lt.s32.totalorder %s774_s21, 5 }
   0x4   : > { %p213_p2 = pnand %p698_p0, %p212_p1 }
   0x5   : > { %v268_v0 = vld [vmem:[%s972_s1] sm:$0xff] (!%p213_p2)  ;;  %vm293_vm0 = vcmask (!%p213_p2), 1043456   ;;  %p242_p3 = scmp.lt.s32.totalorder (!%p213_p2), %s694_s22, 3  ;;  %v776_v1 = vmov (!%p213_p2), 0.0   ;;  %vm777_vm1 = vmmov (!%p213_p2), 0   ;;  %vm277_vm2 = vcmask (!%p213_p2), 64512  }
   0x6   : > { %216 = sbr.rel (%p213_p2) target bundleno = 525 (0x20d), region = 44  ;;  %721 = vmatprep.subr.bf16.mxu0 (!%p213_p2), %v776_v1  ;;  %v269_v2 = vpack.c.bf16 (!%p213_p2), %v268_v0, %v268_v0  ;;  %723 = vmatprep.mubr.msk.bf16.mxu0 (!%p213_p2), %vm777_vm1, %v776_v1  ;;  %v855_v19 = vld [vmem:[%s976_s5] sm:$0xff] (!%p213_p2) }
   0x7   : > { %753 = vmatprep.subr.bf16.mxu1 (!%p213_p2), %v776_v1  ;;  %735 = vmatprep.mubr.msk.bf16.mxu1 (!%p213_p2), %vm777_vm1, %v776_v1  ;;  %v701_v23 = vld [vmem:[%s973_s2] ss:$0 sm:$0xff] (!%p213_p2) }
   0x8   : > { %v295_v3 = vsel (!%p213_p2), %vm293_vm0, %v269_v2, 0 }
   0x9   : > { %722 = vmatpush3.bf16.msra.mxu0 (!%p213_p2), %v295_v3  ;;  %754 = vmatpush3.bf16.msra.mxu1 (!%p213_p2), %v295_v3 }
   0xa   : > { %743 = vmatprep.subr.mxu1 (!%p213_p2), %v776_v1 }
   0xd   : > { %s979_s22 = smov (!%p242_p3, %s694_s22), 3 }
   0xe   : > { %s755_s25 = smul.u32 80, %s979_s22 }
  0x10   : > { %s246_s28 = scalar_lea.vmem %s971_s0, %s755_s25  ;;  %s251_s15 = scalar_lea.vmem %s977_s6, %s755_s25 }
  0x11   : > { %v253_v4 = vld [vmem:[%s246_s28] sm:$0xff]  ;;  %v254_v5 = vld [vmem:[%s246_s28 + $0x8] sm:$0xff]  ;;  %v259_v7 = vld [vmem:[%s246_s28 + $0x30] sm:$0xff] }
  0x12   : > { %v263_v6 = vpack.c.bf16 %v254_v5, %v253_v4  ;;  %v260_v8 = vld [vmem:[%s246_s28 + $0x38] sm:$0xff]  ;;  %v255_v10 = vld [vmem:[%s246_s28 + $0x10] sm:$0xff]  ;;  %v261_v12 = vld [vmem:[%s246_s28 + $0x40] sm:$0xff] }
  0x13   : > { %v266_v9 = vpack.c.bf16 %v260_v8, %v259_v7  ;;  %v256_v11 = vld [vmem:[%s246_s28 + $0x18] sm:$0xff]  ;;  %v262_v13 = vld [vmem:[%s246_s28 + $0x48] sm:$0xff]  ;;  %v257_v16 = vld [vmem:[%s246_s28 + $0x20] sm:$0xff] }
  0x14   : > { %724 = vmatmul.mubr.msk.bf16.vlgmr.msra.gmra.mrb[0].mxu0 %vm277_vm2, %v263_v6  ;;  %v264_v14 = vpack.c.bf16 %v256_v11, %v255_v10  ;;  %v267_v15 = vpack.c.bf16 %v262_v13, %v261_v12  ;;  %v258_v17 = vld [vmem:[%s246_s28 + $0x28] sm:$0xff] }
  0x15   : > { %727 = vmatprep.mubr.msk.bf16.mxu0 %vm777_vm1, %v776_v1  ;;  %736 = vmatmul.mubr.msk.bf16.vlgmr.msra.gmra.mrb[0].mxu1 %vm277_vm2, %v266_v9  ;;  %v265_v18 = vpack.c.bf16 %v258_v17, %v257_v16 }
  0x16   : > { %739 = vmatprep.mubr.msk.bf16.mxu1 %vm777_vm1, %v776_v1  ;;  %744 = vmatpush3.msra.mxu1 %v855_v19 }
  0x17   : > { %748 = vmatprep.subr.mxu1 %v776_v1 }
  0x1c   : > { %728 = vmatmul.mubr.msk.bf16.gmra.mrb[4].mxu0 %vm277_vm2, %v264_v14 }
  0x1d   : > { %731 = vmatprep.mubr.msk.bf16.mxu0 %vm777_vm1, %v776_v1  ;;  %740 = vmatmul.mubr.msk.bf16.gmra.mrb[4].mxu1 %vm277_vm2, %v267_v15 }
  0x1e   : > { %745 = vmatprep.mubr.msk.f32.mxu1 %vm777_vm1, %v776_v1 }
  0x24   : > { %732 = vmatmul.mubr.msk.bf16.gmra.mrb[8].mxu0 %vm277_vm2, %v265_v18 }
  0xe7   : > { %v331_v20 = vpop.f32.mrb[0].mxu0 }
  0xe8   : > { %v725_v21 = vpop.f32.mrb[1].mxu0  ;;  %v355_v22 = vpop.f32.mrb[0].mxu1  ;;  %v864_v30 = vadd.f32 %v701_v23, %v331_v20 }
  0xe9   : > { %v334_v24 = vpop.f32.mrb[2].mxu0  ;;  %v737_v25 = vpop.f32.mrb[1].mxu1  ;;  %v890_v58 = vadd.f32 %v701_v23, %v355_v22 }
  0xea   : > { %v862_v26 = vadd.f32 %v701_v23, %v334_v24  ;;  %v726_v27 = vpop.f32.mrb[3].mxu0  ;;  %v358_v28 = vpop.f32.mrb[2].mxu1  ;;  %v395_v33 = vmul.f32 %v864_v30, %v864_v30  ;;  %v370_v38 = vsel %vm277_vm2, %v864_v30, 0.0 }
  0xeb   : > { %v738_v29 = vpop.f32.mrb[3].mxu1  ;;  %v894_v62 = vadd.f32 %v701_v23, %v358_v28  ;;  %v401_v8 = vmul.f32 %v890_v58, %v890_v58  ;;  %v381_v12 = vsel %vm277_vm2, %v890_v58, 0.0 }
  0xec   : > { %v396_v31 = vmul.f32 %v862_v26, %v862_v26  ;;  %v371_v34 = vsel %vm277_vm2, %v862_v26, 0.0  ;;  %v405_v49 = vsel %vm277_vm2, %v395_v33, 0.0 }
  0xed   : > { %v372_v47 = vadd.f32 %v371_v34, %v370_v38  ;;  %v402_v15 = vmul.f32 %v894_v62, %v894_v62  ;;  %v416_v22 = vsel %vm277_vm2, %v401_v8, 0.0  ;;  %v383_v24 = vsel %vm277_vm2, %v894_v62, 0.0 }
  0xee   : > { %v406_v41 = vsel %vm277_vm2, %v396_v31, 0.0 }
  0xef   : > { %v339_v32 = vpop.f32.mrb[4].mxu0  ;;  %v407_v52 = vadd.f32 %v406_v41, %v405_v49  ;;  %v418_v29 = vsel %vm277_vm2, %v402_v15, 0.0 }
  0xf0   : > { %v872_v35 = vadd.f32 %v701_v23, %v339_v32  ;;  %v729_v36 = vpop.f32.mrb[5].mxu0  ;;  %v363_v37 = vpop.f32.mrb[4].mxu1 }
  0xf1   : > { %v342_v39 = vpop.f32.mrb[6].mxu0  ;;  %v741_v40 = vpop.f32.mrb[5].mxu1  ;;  %v902_v5 = vadd.f32 %v701_v23, %v363_v37 }
  0xf2   : > { %v373_v42 = vsel %vm277_vm2, %v872_v35, 0.0  ;;  %v397_v43 = vmul.f32 %v872_v35, %v872_v35  ;;  %v881_v44 = vadd.f32 %v701_v23, %v342_v39  ;;  %v730_v45 = vpop.f32.mrb[7].mxu0  ;;  %v366_v46 = vpop.f32.mrb[6].mxu1 }
  0xf3   : > { %v742_v48 = vpop.f32.mrb[7].mxu1  ;;  %v374_v53 = vadd.f32 %v373_v42, %v372_v47  ;;  %v403_v17 = vmul.f32 %v902_v5, %v902_v5  ;;  %v918_v18 = vadd.f32 %v701_v23, %v366_v46  ;;  %v385_v25 = vsel %vm277_vm2, %v902_v5, 0.0 }
  0xf4   : > { %v408_v50 = vsel %vm277_vm2, %v397_v43, 0.0  ;;  %v398_v51 = vmul.f32 %v881_v44, %v881_v44  ;;  %v375_v54 = vsel %vm277_vm2, %v881_v44, 0.0 }
  0xf5   : > { %v409_v55 = vadd.f32 %v408_v50, %v407_v52  ;;  %v376_v61 = vadd.f32 %v375_v54, %v374_v53  ;;  %v420_v31 = vsel %vm277_vm2, %v403_v17, 0.0  ;;  %v387_v34 = vsel %vm277_vm2, %v918_v18, 0.0 }
  0xf6   : > { %v410_v57 = vsel %vm277_vm2, %v398_v51, 0.0 }
  0xf7   : > { %v347_v56 = vpop.f32.mrb[8].mxu0  ;;  %v411_v6 = vadd.f32 %v410_v57, %v409_v55 }
  0xf8   : > { %v892_v59 = vadd.f32 %v701_v23, %v347_v56  ;;  %v733_v60 = vpop.f32.mrb[9].mxu0 }
  0xf9   : > { %v350_v63 = vpop.f32.mrb[10].mxu0 }
  0xfa   : > { %v377_v0 = vsel %vm277_vm2, %v892_v59, 0.0  ;;  %v399_v2 = vmul.f32 %v892_v59, %v892_v59  ;;  %v900_v3 = vadd.f32 %v701_v23, %v350_v63  ;;  %v734_v4 = vpop.f32.mrb[11].mxu0  ;;  %v404_v23 = vmul.f32 %v918_v18, %v918_v18 }
  0xfb   : > { %v378_v7 = vadd.f32 %v377_v0, %v376_v61  ;;  %v588_v0 = vlaneseq }
  0xfc   : > { %v412_v9 = vsel %vm277_vm2, %v399_v2, 0.0  ;;  %v379_v10 = vsel %vm277_vm2, %v900_v3, 0.0  ;;  %v400_v11 = vmul.f32 %v900_v3, %v900_v3  ;;  %v422_v38 = vsel %vm277_vm2, %v404_v23, 0.0 }
  0xfd   : > { %v413_v13 = vadd.f32 %v412_v9, %v411_v6  ;;  %v380_v14 = vadd.f32 %v379_v10, %v378_v7  ;;  %v589_v2 = vshrl.u32 %v588_v0, 7  ;;  %v584_v7 = vld [vmem:[%s975_s4] sm:$0x1] }
  0xfe   : > { %v414_v16 = vsel %vm277_vm2, %v400_v11, 0.0 }
  0xff   : > { %v382_v20 = vadd.f32 %v381_v12, %v380_v14  ;;  %v415_v21 = vadd.f32 %v414_v16, %v413_v13  ;;  %v590_v4 = vsub.s32 0, %v589_v2 }
 0x101   : > { %v417_v27 = vadd.f32 %v416_v22, %v415_v21  ;;  %v384_v28 = vadd.f32 %v383_v24, %v382_v20 }
 0x103   : > { %v386_v32 = vadd.f32 %v385_v25, %v384_v28  ;;  %v419_v33 = vadd.f32 %v418_v29, %v417_v27 }
 0x105   : > { %v421_v36 = vadd.f32 %v420_v31, %v419_v33  ;;  %v388_v37 = vadd.f32 %v387_v34, %v386_v32 }
 0x107   : > { %v389_v39 = vrot.slane %v388_v37, 4  ;;  %v423_v40 = vadd.f32 %v422_v38, %v421_v36 }
 0x109   : > { %v390_v41 = vadd.f32 %v389_v39, %v388_v37  ;;  %v424_v42 = vrot.slane %v423_v40, 4 }
 0x10b   : > { %v391_v43 = vrot.slane %v390_v41, 2  ;;  %v425_v45 = vadd.f32 %v424_v42, %v423_v40 }
 0x10d   : > { %v392_v46 = vadd.f32 %v391_v43, %v390_v41  ;;  %v426_v47 = vrot.slane %v425_v45, 2 }
 0x10f   : > { %v393_v48 = vrot.slane %v392_v46, 1  ;;  %v427_v49 = vadd.f32 %v426_v47, %v425_v45 }
 0x111   : > { %v394_v50 = vadd.f32 %v393_v48, %v392_v46  ;;  %v428_v51 = vrot.slane %v427_v49, 1 }
 0x113   : > { %746 = vmatmul.mubr.msk.f32.vlgmr.msra.gmra.mrb[8].mxu1 %vm277_vm2, %v394_v50  ;;  %v429_v52 = vadd.f32 %v428_v51, %v427_v49 }
 0x114   : > { %749 = vmatpush3.msra.mxu1 %v855_v19  ;;  %750 = vmatprep.mubr.msk.f32.mxu1 %vm777_vm1, %v776_v1  ;;  %v580_v19 = vld [vmem:[%s974_s3] sm:$0x1] }
 0x117   : > { %751 = vmatmul.mubr.msk.f32.vlgmr.msra.gmra.mrb[10].mxu1 %vm277_vm2, %v429_v52 }
 0x1e6   : > { %v500_v53 = vpop.f32.mrb[8].mxu1 }
 0x1e7   : > { %v747_v54 = vpop.f32.mrb[9].mxu1  ;;  %v577_v55 = vmul.f32 %v500_v53, %v500_v53 }
 0x1ea   : > { %v573_v56 = vpop.f32.mrb[10].mxu1 }
 0x1eb   : > { %v578_v57 = vsub.f32 %v573_v56, %v577_v55  ;;  %v752_v60 = vpop.f32.mrb[11].mxu1 }
 0x1ed   : > { %v579_v61 = vmax.f32 %v578_v57, 0.0 }
 0x1ef   : > { %v581_v63 = vadd.f32 1e-05, %v579_v61 }
 0x1f1   : > { %766 = vrsqrt.f32 %v581_v63 }
 0x1fb   : > { %v767_v1 = vpop.eup %766 }
 0x1fc   : > { %v583_v6 = vmul.f32 %v767_v1, %v580_v19 }
 0x1fe   : > { %v585_v8 = vmul.f32 %v583_v6, %v500_v53  ;;  %v591_v9 = vrot.slane %v583_v6, %v590_v4 }
 0x200   : > { %v586_v10 = vsub.f32 %v584_v7, %v585_v8  ;;  %v593_v11 = vmul.f32 %v591_v9, %v864_v30  ;;  %v594_v12 = vmul.f32 %v591_v9, %v862_v26  ;;  %v595_v13 = vmul.f32 %v591_v9, %v872_v35 }
 0x201   : > { %v596_v14 = vmul.f32 %v591_v9, %v881_v44  ;;  %v597_v15 = vmul.f32 %v591_v9, %v892_v59  ;;  %v598_v16 = vmul.f32 %v591_v9, %v900_v3  ;;  %v599_v20 = vmul.f32 %v591_v9, %v890_v58 }
 0x202   : > { %v607_v17 = vrot.slane %v586_v10, %v590_v4  ;;  %v600_v21 = vmul.f32 %v591_v9, %v894_v62  ;;  %v601_v22 = vmul.f32 %v591_v9, %v902_v5  ;;  %v602_v24 = vmul.f32 %v591_v9, %v918_v18 }
 0x204   : > { %v609_v30 = vadd.f32 %v607_v17, %v593_v11  ;;  %v610_v25 = vadd.f32 %v607_v17, %v594_v12  ;;  %v611_v26 = vadd.f32 %v607_v17, %v595_v13  ;;  %v612_v27 = vadd.f32 %v607_v17, %v596_v14 }
 0x205   : > { %v613_v35 = vadd.f32 %v607_v17, %v597_v15  ;;  %v614_v44 = vadd.f32 %v607_v17, %v598_v16  ;;  %v615_v59 = vadd.f32 %v607_v17, %v599_v20  ;;  %v616_v3 = vadd.f32 %v607_v17, %v600_v21 }
 0x206   : > { %v617_v58 = vadd.f32 %v607_v17, %v601_v22  ;;  %v618_v28 = vadd.f32 %v607_v17, %v602_v24  ;;  %v619_v62 = vmax.f32 %v609_v30, 0.0  ;;  %v620_v29 = vmax.f32 %v610_v25, 0.0 }
 0x207   : > { %v621_v5 = vmax.f32 %v611_v26, 0.0  ;;  %v622_v31 = vmax.f32 %v612_v27, 0.0  ;;  %v623_v18 = vmax.f32 %v613_v35, 0.0  ;;  %v624_v23 = vmax.f32 %v614_v44, 0.0 }
 0x208   : > { %v625_v32 = vmax.f32 %v615_v59, 0.0  ;;  %v626_v33 = vmax.f32 %v616_v3, 0.0  ;;  %v627_v34 = vmax.f32 %v617_v58, 0.0  ;;  %v628_v36 = vmax.f32 %v618_v28, 0.0  ;;  %629 = vst.msk [vmem:[%s251_s15] sm:$0xff] %vm277_vm2, %v619_v62  ;;  %630 = vst.msk [vmem:[%s251_s15 + $0x8] sm:$0xff] %vm277_vm2, %v620_v29 }
 0x209   : > { %631 = vst.msk [vmem:[%s251_s15 + $0x10] sm:$0xff] %vm277_vm2, %v621_v5  ;;  %632 = vst.msk [vmem:[%s251_s15 + $0x18] sm:$0xff] %vm277_vm2, %v622_v31 }
 0x20a   : > { %633 = vst.msk [vmem:[%s251_s15 + $0x20] sm:$0xff] %vm277_vm2, %v623_v18  ;;  %634 = vst.msk [vmem:[%s251_s15 + $0x28] sm:$0xff] %vm277_vm2, %v624_v23 }
 0x20b   : > { %635 = vst.msk [vmem:[%s251_s15 + $0x30] sm:$0xff] %vm277_vm2, %v625_v32  ;;  %636 = vst.msk [vmem:[%s251_s15 + $0x38] sm:$0xff] %vm277_vm2, %v626_v33 }
 0x20c   : > { %637 = vst.msk [vmem:[%s251_s15 + $0x40] sm:$0xff] %vm277_vm2, %v627_v34  ;;  %638 = vst.msk [vmem:[%s251_s15 + $0x48] sm:$0xff] %vm277_vm2, %v628_v36 }
 0x20d PF: > { %s16_s21 = sadd.s32 1, %s774_s21  }
 0x20e   : > { %p13_p4 = scmp.ge.s32.totalorder %s16_s21, 6  }
 0x210   :  { %15 = sbr.rel (!%p13_p4) target bundleno = 1 (0x1), region = 74 }

// kernel: reverse.1
= control target key start
LH: loop header
LB: loop body
LE: loop exit
PB: predicated region body
PF: predicated region fallthrough
CT: control target
= control target key end

     0   :  { %v111_v16 = vld [vmem:[#allocation1 + $0x78] sm:$0xf]  ;;  %v121_v17 = vld [vmem:[#allocation1 + $0x70] sm:$0xf]  ;;  %v131_v18 = vld [vmem:[#allocation1 + $0x68] sm:$0xf]  ;;  %v268_v39 = vlaneseq  ;;  %s891_s0 = inlined_call_operand.vmem [shape: f32[4,4,16,3], index: 0, kind: input, shape index: {}]   ;;  %s892_s1 = inlined_call_operand.vmem [shape: f32[4,4,16,3], index: 1, kind: output, shape index: {}]  }
   0x1   :  { %v18_v0 = vld [vmem:[%s891_s0] sm:$0xf]  ;;  %v20_v1 = vld [vmem:[%s891_s0 + $0x4] sm:$0xf]  ;;  %v22_v2 = vld [vmem:[%s891_s0 + $0x8] sm:$0xf] }
   0x2   :  { %19 = vst [vmem:[#allocation1 + $0x4] sm:$0xf] %v18_v0  ;;  %21 = vst [vmem:[#allocation1 + $0xc] sm:$0xf] %v20_v1  ;;  %v24_v3 = vld [vmem:[%s891_s0 + $0xc] sm:$0xf] }
   0x3   :  { %23 = vst [vmem:[#allocation1 + $0x14] sm:$0xf] %v22_v2  ;;  %v26_v4 = vld [vmem:[%s891_s0 + $0x10] sm:$0xf]  ;;  %v28_v5 = vld [vmem:[%s891_s0 + $0x14] sm:$0xf] }
   0x4   :  { %25 = vst [vmem:[#allocation1 + $0x1c] sm:$0xf] %v24_v3  ;;  %27 = vst [vmem:[#allocation1 + $0x24] sm:$0xf] %v26_v4  ;;  %v30_v6 = vld [vmem:[%s891_s0 + $0x18] sm:$0xf] }
   0x5   :  { %29 = vst [vmem:[#allocation1 + $0x2c] sm:$0xf] %v28_v5  ;;  %v32_v7 = vld [vmem:[%s891_s0 + $0x1c] sm:$0xf]  ;;  %v34_v8 = vld [vmem:[%s891_s0 + $0x20] sm:$0xf] }
   0x6   :  { %31 = vst [vmem:[#allocation1 + $0x34] sm:$0xf] %v30_v6  ;;  %33 = vst [vmem:[#allocation1 + $0x3c] sm:$0xf] %v32_v7  ;;  %v36_v9 = vld [vmem:[%s891_s0 + $0x24] sm:$0xf] }
   0x7   :  { %35 = vst [vmem:[#allocation1 + $0x44] sm:$0xf] %v34_v8  ;;  %v38_v10 = vld [vmem:[%s891_s0 + $0x28] sm:$0xf]  ;;  %v40_v11 = vld [vmem:[%s891_s0 + $0x2c] sm:$0xf] }
   0x8   :  { %37 = vst [vmem:[#allocation1 + $0x4c] sm:$0xf] %v36_v9  ;;  %39 = vst [vmem:[#allocation1 + $0x54] sm:$0xf] %v38_v10  ;;  %v42_v12 = vld [vmem:[%s891_s0 + $0x30] sm:$0xf] }
   0x9   :  { %41 = vst [vmem:[#allocation1 + $0x5c] sm:$0xf] %v40_v11  ;;  %v44_v13 = vld [vmem:[%s891_s0 + $0x34] sm:$0xf]  ;;  %v46_v14 = vld [vmem:[%s891_s0 + $0x38] sm:$0xf] }
   0xa   :  { %43 = vst [vmem:[#allocation1 + $0x64] sm:$0xf] %v42_v12  ;;  %45 = vst [vmem:[#allocation1 + $0x6c] sm:$0xf] %v44_v13  ;;  %v48_v15 = vld [vmem:[%s891_s0 + $0x3c] sm:$0xf] }
   0xb   :  { %47 = vst [vmem:[#allocation1 + $0x74] sm:$0xf] %v46_v14  ;;  %49 = vst [vmem:[#allocation1 + $0x7c] sm:$0xf] %v48_v15  ;;  %v141_v19 = vld [vmem:[#allocation1 + $0x60] sm:$0xf] }
   0xc   :  { %113 = vst [vmem:[#allocation0 + $0xf0] sm:$0xf] %v111_v16  ;;  %123 = vst [vmem:[#allocation0 + $0xe0] sm:$0xf] %v121_v17  ;;  %v151_v20 = vld [vmem:[#allocation1 + $0x58] sm:$0xf] }
   0xd   :  { %133 = vst [vmem:[#allocation0 + $0xd0] sm:$0xf] %v131_v18  ;;  %143 = vst [vmem:[#allocation0 + $0xc0] sm:$0xf] %v141_v19  ;;  %v161_v21 = vld [vmem:[#allocation1 + $0x50] sm:$0xf] }
   0xe   :  { %153 = vst [vmem:[#allocation0 + $0xb0] sm:$0xf] %v151_v20  ;;  %v171_v22 = vld [vmem:[#allocation1 + $0x48] sm:$0xf]  ;;  %v181_v23 = vld [vmem:[#allocation1 + $0x40] sm:$0xf] }
   0xf   :  { %163 = vst [vmem:[#allocation0 + $0xa0] sm:$0xf] %v161_v21  ;;  %173 = vst [vmem:[#allocation0 + $0x90] sm:$0xf] %v171_v22  ;;  %v191_v24 = vld [vmem:[#allocation1 + $0x38] sm:$0xf] }
  0x10   :  { %183 = vst [vmem:[#allocation0 + $0x80] sm:$0xf] %v181_v23  ;;  %v201_v25 = vld [vmem:[#allocation1 + $0x30] sm:$0xf]  ;;  %v211_v26 = vld [vmem:[#allocation1 + $0x28] sm:$0xf] }
  0x11   :  { %193 = vst [vmem:[#allocation0 + $0x70] sm:$0xf] %v191_v24  ;;  %203 = vst [vmem:[#allocation0 + $0x60] sm:$0xf] %v201_v25  ;;  %v206_v27 = vld [vmem:[#allocation1 + $0x2c] sm:$0xf] }
  0x12   :  { %213 = vst [vmem:[#allocation0 + $0x50] sm:$0xf] %v211_v26  ;;  %v216_v28 = vld [vmem:[#allocation1 + $0x24] sm:$0xf]  ;;  %v221_v29 = vld [vmem:[#allocation1 + $0x20] sm:$0xf] }
  0x13   :  { %v176_v30 = vld [vmem:[#allocation1 + $0x44] sm:$0xf]  ;;  %v186_v31 = vld [vmem:[#allocation1 + $0x3c] sm:$0xf]  ;;  %v196_v32 = vld [vmem:[#allocation1 + $0x34] sm:$0xf] }
  0x14   :  { %208 = vst [vmem:[#allocation0 + $0x58] sm:$0xf] %v206_v27  ;;  %218 = vst [vmem:[#allocation0 + $0x48] sm:$0xf] %v216_v28  ;;  %v146_v33 = vld [vmem:[#allocation1 + $0x5c] sm:$0xf] }
  0x15   :  { %223 = vst [vmem:[#allocation0 + $0x40] sm:$0xf] %v221_v29  ;;  %v156_v34 = vld [vmem:[#allocation1 + $0x54] sm:$0xf]  ;;  %v166_v35 = vld [vmem:[#allocation1 + $0x4c] sm:$0xf] }
  0x16   :  { %178 = vst [vmem:[#allocation0 + $0x88] sm:$0xf] %v176_v30  ;;  %188 = vst [vmem:[#allocation0 + $0x78] sm:$0xf] %v186_v31  ;;  %v116_v36 = vld [vmem:[#allocation1 + $0x74] sm:$0xf] }
  0x17   :  { %198 = vst [vmem:[#allocation0 + $0x68] sm:$0xf] %v196_v32  ;;  %v126_v37 = vld [vmem:[#allocation1 + $0x6c] sm:$0xf]  ;;  %v136_v38 = vld [vmem:[#allocation1 + $0x64] sm:$0xf] }
  0x18   :  { %148 = vst [vmem:[#allocation0 + $0xb8] sm:$0xf] %v146_v33  ;;  %158 = vst [vmem:[#allocation0 + $0xa8] sm:$0xf] %v156_v34  ;;  %v106_v40 = vld [vmem:[#allocation1 + $0x7c] sm:$0xf] }
  0x19   :  { %168 = vst [vmem:[#allocation0 + $0x98] sm:$0xf] %v166_v35  ;;  %118 = vst [vmem:[#allocation0 + $0xe8] sm:$0xf] %v116_v36  ;;  %v226_v41 = vld [vmem:[#allocation1 + $0x1c] sm:$0xf] }
  0x1a   :  { %128 = vst [vmem:[#allocation0 + $0xd8] sm:$0xf] %v126_v37  ;;  %138 = vst [vmem:[#allocation0 + $0xc8] sm:$0xf] %v136_v38  ;;  %v231_v42 = vld [vmem:[#allocation1 + $0x18] sm:$0xf] }
  0x1b   :  { %108 = vst [vmem:[#allocation0 + $0xf8] sm:$0xf] %v106_v40  ;;  %228 = vst [vmem:[#allocation0 + $0x38] sm:$0xf] %v226_v41  ;;  %v236_v43 = vld [vmem:[#allocation1 + $0x14] sm:$0xf] }
  0x1c   :  { %233 = vst [vmem:[#allocation0 + $0x30] sm:$0xf] %v231_v42  ;;  %v241_v44 = vld [vmem:[#allocation1 + $0x10] sm:$0xf]  ;;  %v246_v45 = vld [vmem:[#allocation1 + $0xc] sm:$0xf] }
  0x1d   :  { %238 = vst [vmem:[#allocation0 + $0x28] sm:$0xf] %v236_v43  ;;  %243 = vst [vmem:[#allocation0 + $0x20] sm:$0xf] %v241_v44  ;;  %v251_v46 = vld [vmem:[#allocation1 + $0x8] sm:$0xf] }
  0x1e   :  { %248 = vst [vmem:[#allocation0 + $0x18] sm:$0xf] %v246_v45  ;;  %v255_v47 = vld [vmem:[#allocation1 + $0x4] sm:$0xf]  ;;  %v258_v48 = vld [vmem:[#allocation1] sm:$0xf] }
  0x1f   :  { %253 = vst [vmem:[#allocation0 + $0x10] sm:$0xf] %v251_v46  ;;  %257 = vst [vmem:[#allocation0 + $0x8] sm:$0xf] %v255_v47  ;;  %v832_v49 = vshrl.u32 %v268_v39, 7 }
  0x20   :  { %259 = vst [vmem:[#allocation0] sm:$0xf] %v258_v48  ;;  %v331_v50 = vld [vmem:[#allocation0 + $0x57] ss:$-1 sm:$0xff]  ;;  %v345_v51 = vld [vmem:[#allocation0 + $0x67] ss:$-1 sm:$0xff] }
  0x21   :  { %v317_v52 = vld [vmem:[#allocation0 + $0x47] ss:$-1 sm:$0xff]  ;;  %v322_v53 = vld [vmem:[#allocation0 + $0x4f] ss:$-1 sm:$0xff]  ;;  %v332_v54 = vrot.slane %v331_v50, 5  ;;  %v346_v55 = vrot.slane %v345_v51, 5 }
  0x22   :  { %vm270_vm0 = vcmp.lt.s32.totalorder %v832_v49, 3  ;;  %v318_v56 = vrot.slane %v317_v52, 5  ;;  %v323_v57 = vrot.slane %v322_v53, 5  ;;  %v336_v58 = vld [vmem:[#allocation0 + $0x5f] ss:$-1 sm:$0xff] }
  0x23   :  { %333 = vst [vmem:[#allocation2 + $0x28] sm:$0xff] %v332_v54  ;;  %v337_v59 = vrot.slane %v336_v58, 5  ;;  %347 = vst [vmem:[#allocation2 + $0x30] sm:$0xff] %v346_v55  ;;  %v350_v60 = vld [vmem:[#allocation0 + $0x6f] ss:$-1 sm:$0xff] }
  0x24   :  { %v359_v61 = vld [vmem:[#allocation0 + $0x77] ss:$-1 sm:$0xff]  ;;  %319 = vst [vmem:[#allocation2 + $0x20] sm:$0xff] %v318_v56  ;;  %v351_v62 = vrot.slane %v350_v60, 5  ;;  %v364_v0 = vld [vmem:[#allocation0 + $0x7f] ss:$-1 sm:$0xff] }
  0x25   :  { %v360_v63 = vrot.slane %v359_v61, 5  ;;  %v373_v1 = vld [vmem:[#allocation0 + $0x87] ss:$-1 sm:$0xff]  ;;  %v303_v2 = vld [vmem:[#allocation0 + $0x37] ss:$-1 sm:$0xff]  ;;  %327 = vst.msk [vmem:[#allocation2 + $0x20] sm:$0xff] %vm270_vm0, %v323_v57 }
  0x26   :  { %v308_v3 = vld [vmem:[#allocation0 + $0x3f] ss:$-1 sm:$0xff]  ;;  %341 = vst.msk [vmem:[#allocation2 + $0x28] sm:$0xff] %vm270_vm0, %v337_v59  ;;  %v365_v4 = vrot.slane %v364_v0, 5  ;;  %v374_v5 = vrot.slane %v373_v1, 5  ;;  %355 = vst.msk [vmem:[#allocation2 + $0x30] sm:$0xff] %vm270_vm0, %v351_v62 }
  0x27   :  { %v280_v6 = vld [vmem:[#allocation0 + $0x1f] ss:$-1 sm:$0xff]  ;;  %v289_v7 = vld [vmem:[#allocation0 + $0x27] ss:$-1 sm:$0xff]  ;;  %v294_v8 = vld [vmem:[#allocation0 + $0x2f] ss:$-1 sm:$0xff] }
  0x28   :  { %361 = vst [vmem:[#allocation2 + $0x38] sm:$0xff] %v360_v63  ;;  %v261_v9 = vld [vmem:[#allocation0 + $0x7] ss:$-1 sm:$0xff]  ;;  %v266_v10 = vld [vmem:[#allocation0 + $0xf] ss:$-1 sm:$0xff]  ;;  %375 = vst [vmem:[#allocation2 + $0x40] sm:$0xff] %v374_v5 }
  0x29   :  { %v275_v11 = vld [vmem:[#allocation0 + $0x17] ss:$-1 sm:$0xff]  ;;  %369 = vst.msk [vmem:[#allocation2 + $0x38] sm:$0xff] %vm270_vm0, %v365_v4  ;;  %v262_v12 = vrot.slane %v261_v9, 5  ;;  %v267_v13 = vrot.slane %v266_v10, 5  ;;  %v281_v15 = vrot.slane %v280_v6, 5 }
  0x2a   :  { %v276_v14 = vrot.slane %v275_v11, 5  ;;  %v378_v16 = vld [vmem:[#allocation0 + $0x8f] ss:$-1 sm:$0xff]  ;;  %v290_v17 = vrot.slane %v289_v7, 5  ;;  %v295_v18 = vrot.slane %v294_v8, 5  ;;  %v304_v19 = vrot.slane %v303_v2, 5 }
  0x2b   :  { %v309_v20 = vrot.slane %v308_v3, 5  ;;  %v387_v21 = vld [vmem:[#allocation0 + $0x97] ss:$-1 sm:$0xff]  ;;  %263 = vst [vmem:[#allocation2] sm:$0xff] %v262_v12  ;;  %v379_v22 = vrot.slane %v378_v16, 5 }
  0x2c   :  { %277 = vst [vmem:[#allocation2 + $0x8] sm:$0xff] %v276_v14  ;;  %v388_v23 = vrot.slane %v387_v21, 5  ;;  %v392_v24 = vld [vmem:[#allocation0 + $0x9f] ss:$-1 sm:$0xff]  ;;  %v401_v25 = vld [vmem:[#allocation0 + $0xa7] ss:$-1 sm:$0xff] }
  0x2d   :  { %271 = vst.msk [vmem:[#allocation2] sm:$0xff] %vm270_vm0, %v267_v13  ;;  %285 = vst.msk [vmem:[#allocation2 + $0x8] sm:$0xff] %vm270_vm0, %v281_v15  ;;  %v393_v26 = vrot.slane %v392_v24, 5  ;;  %v402_v27 = vrot.slane %v401_v25, 5  ;;  %v406_v28 = vld [vmem:[#allocation0 + $0xaf] ss:$-1 sm:$0xff] }
  0x2e   :  { %291 = vst [vmem:[#allocation2 + $0x10] sm:$0xff] %v290_v17  ;;  %305 = vst [vmem:[#allocation2 + $0x18] sm:$0xff] %v304_v19  ;;  %v415_v29 = vld [vmem:[#allocation0 + $0xb7] ss:$-1 sm:$0xff]  ;;  %v407_v30 = vrot.slane %v406_v28, 5 }
  0x2f   :  { %299 = vst.msk [vmem:[#allocation2 + $0x10] sm:$0xff] %vm270_vm0, %v295_v18  ;;  %313 = vst.msk [vmem:[#allocation2 + $0x18] sm:$0xff] %vm270_vm0, %v309_v20  ;;  %v416_v31 = vrot.slane %v415_v29, 5  ;;  %v420_v32 = vld [vmem:[#allocation0 + $0xbf] ss:$-1 sm:$0xff] }
  0x30   :  { %383 = vst.msk [vmem:[#allocation2 + $0x40] sm:$0xff] %vm270_vm0, %v379_v22  ;;  %389 = vst [vmem:[#allocation2 + $0x48] sm:$0xff] %v388_v23  ;;  %v429_v33 = vld [vmem:[#allocation0 + $0xc7] ss:$-1 sm:$0xff]  ;;  %v421_v34 = vrot.slane %v420_v32, 5 }
  0x31   :  { %397 = vst.msk [vmem:[#allocation2 + $0x48] sm:$0xff] %vm270_vm0, %v393_v26  ;;  %403 = vst [vmem:[#allocation2 + $0x50] sm:$0xff] %v402_v27  ;;  %v430_v35 = vrot.slane %v429_v33, 5  ;;  %v434_v36 = vld [vmem:[#allocation0 + $0xcf] ss:$-1 sm:$0xff] }
  0x32   :  { %v443_v37 = vld [vmem:[#allocation0 + $0xd7] ss:$-1 sm:$0xff]  ;;  %411 = vst.msk [vmem:[#allocation2 + $0x50] sm:$0xff] %vm270_vm0, %v407_v30  ;;  %417 = vst [vmem:[#allocation2 + $0x58] sm:$0xff] %v416_v31  ;;  %v435_v38 = vrot.slane %v434_v36, 5 }
  0x33   :  { %v444_v39 = vrot.slane %v443_v37, 5  ;;  %v448_v40 = vld [vmem:[#allocation0 + $0xdf] ss:$-1 sm:$0xff]  ;;  %v457_v41 = vld [vmem:[#allocation0 + $0xe7] ss:$-1 sm:$0xff]  ;;  %425 = vst.msk [vmem:[#allocation2 + $0x58] sm:$0xff] %vm270_vm0, %v421_v34 }
  0x34   :  { %431 = vst [vmem:[#allocation2 + $0x60] sm:$0xff] %v430_v35  ;;  %v449_v42 = vrot.slane %v448_v40, 5  ;;  %v458_v43 = vrot.slane %v457_v41, 5  ;;  %v462_v44 = vld [vmem:[#allocation0 + $0xef] ss:$-1 sm:$0xff] }
  0x35   :  { %v471_v45 = vld [vmem:[#allocation0 + $0xf7] ss:$-1 sm:$0xff]  ;;  %439 = vst.msk [vmem:[#allocation2 + $0x60] sm:$0xff] %vm270_vm0, %v435_v38  ;;  %445 = vst [vmem:[#allocation2 + $0x68] sm:$0xff] %v444_v39  ;;  %v463_v46 = vrot.slane %v462_v44, 5 }
  0x36   :  { %v472_v47 = vrot.slane %v471_v45, 5  ;;  %v476_v48 = vld [vmem:[#allocation0 + $0xff] ss:$-1 sm:$0xff]  ;;  %v506_v50 = vld [vmem:[#allocation2 + $0x20] sm:$0xf]  ;;  %453 = vst.msk [vmem:[#allocation2 + $0x68] sm:$0xff] %vm270_vm0, %v449_v42 }
  0x37   :  { %459 = vst [vmem:[#allocation2 + $0x70] sm:$0xff] %v458_v43  ;;  %v477_v51 = vrot.slane %v476_v48, 5  ;;  %510 = vst [vmem:[#allocation3 + $0x10] sm:$0xf] %v506_v50  ;;  %v512_v52 = vld [vmem:[#allocation2 + $0x28] sm:$0xf] }
  0x38   :  { %v518_v53 = vld [vmem:[#allocation2 + $0x30] sm:$0xf]  ;;  %467 = vst.msk [vmem:[#allocation2 + $0x70] sm:$0xff] %vm270_vm0, %v463_v46  ;;  %473 = vst [vmem:[#allocation2 + $0x78] sm:$0xff] %v472_v47  ;;  %v485_v54 = vld [vmem:[#allocation2] sm:$0xf] }
  0x39   :  { %v489_v55 = vld [vmem:[#allocation2 + $0x8] sm:$0xf]  ;;  %516 = vst [vmem:[#allocation3 + $0x14] sm:$0xf] %v512_v52  ;;  %522 = vst [vmem:[#allocation3 + $0x18] sm:$0xf] %v518_v53 }
  0x3a   :  { %v524_v56 = vld [vmem:[#allocation2 + $0x38] sm:$0xf]  ;;  %481 = vst.msk [vmem:[#allocation2 + $0x78] sm:$0xff] %vm270_vm0, %v477_v51  ;;  %487 = vst [vmem:[#allocation3] sm:$0xf] %v485_v54 }
  0x3b   :  { %492 = vst [vmem:[#allocation3 + $0x4] sm:$0xf] %v489_v55  ;;  %v494_v49 = vld [vmem:[#allocation2 + $0x10] sm:$0xf]  ;;  %v500_v57 = vld [vmem:[#allocation2 + $0x18] sm:$0xf] }
  0x3c   :  { %528 = vst [vmem:[#allocation3 + $0x1c] sm:$0xf] %v524_v56  ;;  %v530_v58 = vld [vmem:[#allocation2 + $0x40] sm:$0xf]  ;;  %498 = vst [vmem:[#allocation3 + $0x8] sm:$0xf] %v494_v49 }
  0x3d   :  { %504 = vst [vmem:[#allocation3 + $0xc] sm:$0xf] %v500_v57  ;;  %534 = vst [vmem:[#allocation3 + $0x20] sm:$0xf] %v530_v58  ;;  %v536_v59 = vld [vmem:[#allocation2 + $0x48] sm:$0xf] }
  0x3e   :  { %540 = vst [vmem:[#allocation3 + $0x24] sm:$0xf] %v536_v59  ;;  %v542_v60 = vld [vmem:[#allocation2 + $0x50] sm:$0xf]  ;;  %v548_v61 = vld [vmem:[#allocation2 + $0x58] sm:$0xf] }
  0x3f   :  { %546 = vst [vmem:[#allocation3 + $0x28] sm:$0xf] %v542_v60  ;;  %552 = vst [vmem:[#allocation3 + $0x2c] sm:$0xf] %v548_v61  ;;  %v554_v62 = vld [vmem:[#allocation2 + $0x60] sm:$0xf] }
  0x40   :  { %558 = vst [vmem:[#allocation3 + $0x30] sm:$0xf] %v554_v62  ;;  %v560_v63 = vld [vmem:[#allocation2 + $0x68] sm:$0xf]  ;;  %v566_v0 = vld [vmem:[#allocation2 + $0x70] sm:$0xf] }
  0x41   :  { %564 = vst [vmem:[#allocation3 + $0x34] sm:$0xf] %v560_v63  ;;  %v600_v1 = vld [vmem:[#allocation3 + $0x10] sm:$0xff]   ;;  %570 = vst [vmem:[#allocation3 + $0x38] sm:$0xf] %v566_v0 }
  0x42   :  { %v572_v2 = vld [vmem:[#allocation2 + $0x78] sm:$0xf]  ;;  %v592_v3 = vld [vmem:[#allocation3] sm:$0xff]   ;;  %601 = vst [vmem:[%s892_s1 + $0x10] sm:$0xff] %v600_v1  }
  0x43   :  { %v604_v4 = vld [vmem:[#allocation3 + $0x18] sm:$0xff]   ;;  %576 = vst [vmem:[#allocation3 + $0x3c] sm:$0xf] %v572_v2  ;;  %593 = vst [vmem:[%s892_s1] sm:$0xff] %v592_v3  }
  0x44   :  { %v596_v5 = vld [vmem:[#allocation3 + $0x8] sm:$0xff]   ;;  %605 = vst [vmem:[%s892_s1 + $0x18] sm:$0xff] %v604_v4  }
  0x45   :  { %597 = vst [vmem:[%s892_s1 + $0x8] sm:$0xff] %v596_v5   ;;  %v608_v6 = vld [vmem:[#allocation3 + $0x20] sm:$0xff]  }
  0x46   :  { %609 = vst [vmem:[%s892_s1 + $0x20] sm:$0xff] %v608_v6   ;;  %v612_v7 = vld [vmem:[#allocation3 + $0x28] sm:$0xff]  }
  0x47   :  { %613 = vst [vmem:[%s892_s1 + $0x28] sm:$0xff] %v612_v7  }
  0x48   :  { %v616_v8 = vld [vmem:[#allocation3 + $0x30] sm:$0xff]  }
  0x49   :  { %617 = vst [vmem:[%s892_s1 + $0x30] sm:$0xff] %v616_v8  }
  0x4a   :  { %v620_v9 = vld [vmem:[#allocation3 + $0x38] sm:$0xff]  }
  0x4b   :  { %621 = vst [vmem:[%s892_s1 + $0x38] sm:$0xff] %v620_v9  }

// kernel: spectral_transform.5
= control target key start
LH: loop header
LB: loop body
LE: loop exit
PB: predicated region body
PF: predicated region fallthrough
CT: control target
= control target key end

     0   :  { %s754_s15 = smov 0   ;;  %s756_s16 = smov 0   ;;  %s928_s0 = inlined_call_operand.vmem [shape: f32[2,144,4], index: 0, kind: input, shape index: {}]   ;;  %s929_s1 = inlined_call_operand.vmem [shape: f32[2,144,4], index: 1, kind: input, shape index: {}]   ;;  %s930_s2 = inlined_call_operand.vmem [shape: f32[4,4], index: 2, kind: input, shape index: {}]   ;;  %s931_s3 = inlined_call_operand.vmem [shape: f32[1,4], index: 3, kind: input, shape index: {}]   ;;  %s932_s4 = inlined_call_operand.vmem [shape: f32[2,144,4], index: 4, kind: output, shape index: {}]  }
   0x1   :  { %s758_s17 = smov 0  }
   0x2 LB: > { %s26_s18 = sadd.s32 1, %s721_s16  ;;  %p610_p0 = scmp.ge.s32.totalorder %s725_s17, 1  ;;  %s725_s17 = sphi %s758_s17, %s14_s17   ;;  %s721_s16 = sphi %s756_s16, %s934_s16   ;;  %s717_s15 = sphi %s754_s15, %s933_s15  }
   0x3   : > { %p28_p1 = scmp.ge.s32.totalorder %s26_s18, 2  ;;  %p200_p2 = scmp.lt.s32.totalorder %s725_s17, 3 }
   0x5   : > { %s936_s18 = smov (%p28_p1, %s26_s18), 0  ;;  %p201_p3 = pnand %p610_p0, %p200_p2 }
   0x6   : > { %v337_v0 = vld [vmem:[%s930_s2] sm:$0xf] (!%p201_p3)  ;;  %vm374_vm0 = vcmask (!%p201_p3), 1041408   ;;  %p244_p4 = scmp.lt.s32.totalorder (!%p201_p3), %s717_s15, 1  ;;  %v727_v1 = vmov (!%p201_p3), 0.0   ;;  %vm728_vm1 = vmmov (!%p201_p3), 0  }
   0x7   : > { %204 = sbr.rel (%p201_p3) target bundleno = 273 (0x111), region = 36  ;;  %636 = vmatprep.subr.bf16.mxu0 (!%p201_p3), %v727_v1  ;;  %v338_v2 = vpack.c.bf16 (!%p201_p3), %v337_v0, %v337_v0  ;;  %638 = vmatprep.mubr.msk.bf16.mxu0 (!%p201_p3), %vm728_vm1, %v727_v1  ;;  %vm346_vm2 = vcmask (!%p201_p3), 31744  }
   0x8   : > { %674 = vmatprep.subr.bf16.mxu1 (!%p201_p3), %v727_v1  ;;  %658 = vmatprep.mubr.msk.bf16.mxu1 (!%p201_p3), %vm728_vm1, %v727_v1 }
   0x9   : > { %v376_v3 = vsel (!%p201_p3), %vm374_vm0, %v338_v2, 0 }
   0xa   : > { %637 = vmatpush3.bf16.msra.mxu0 (!%p201_p3), %v376_v3  ;;  %675 = vmatpush3.bf16.msra.mxu1 (!%p201_p3), %v376_v3 }
   0xe   : > { %s938_s15 = smov (!%p244_p4, %s717_s15), 1 }
   0xf   : > { %s781_s21 = smul.u32 144, %s938_s15 }
  0x11   : > { %s787_s24 = scalar_lea.vmem %s928_s0, %s781_s21  ;;  %s793_s27 = scalar_lea.vmem %s929_s1, %s781_s21 }
  0x12   : > { %v274_v4 = vld [vmem:[%s787_s24] sm:$0xff]  ;;  %v275_v5 = vld [vmem:[%s787_s24 + $0x8] sm:$0xff]  ;;  %v284_v9 = vld [vmem:[%s787_s24 + $0x50] sm:$0xff]  ;;  %s863_s6 = scalar_lea.vmem %s932_s4, %s781_s21 }
  0x13   : > { %v292_v6 = vld [vmem:[%s793_s27] sm:$0xff]  ;;  %v293_v7 = vld [vmem:[%s793_s27 + $0x8] sm:$0xff]  ;;  %v285_v10 = vld [vmem:[%s787_s24 + $0x58] sm:$0xff] }
  0x14   : > { %v310_v8 = vadd.f32 %v292_v6, %v274_v4  ;;  %v311_v11 = vadd.f32 %v293_v7, %v275_v5  ;;  %v302_v12 = vld [vmem:[%s793_s27 + $0x50] sm:$0xff]  ;;  %v303_v13 = vld [vmem:[%s793_s27 + $0x58] sm:$0xff]  ;;  %v286_v21 = vld [vmem:[%s787_s24 + $0x60] sm:$0xff] }
  0x15   : > { %v276_v14 = vld [vmem:[%s787_s24 + $0x10] sm:$0xff]  ;;  %v320_v15 = vadd.f32 %v302_v12, %v284_v9  ;;  %v321_v16 = vadd.f32 %v303_v13, %v285_v10  ;;  %v277_v17 = vld [vmem:[%s787_s24 + $0x18] sm:$0xff]  ;;  %v287_v22 = vld [vmem:[%s787_s24 + $0x68] sm:$0xff] }
  0x16   : > { %v294_v18 = vld [vmem:[%s793_s27 + $0x10] sm:$0xff]  ;;  %v295_v19 = vld [vmem:[%s793_s27 + $0x18] sm:$0xff]  ;;  %v328_v20 = vpack.c.bf16 %v311_v11, %v310_v8  ;;  %v304_v23 = vld [vmem:[%s793_s27 + $0x60] sm:$0xff] }
  0x17   : > { %v333_v24 = vpack.c.bf16 %v321_v16, %v320_v15  ;;  %v305_v25 = vld [vmem:[%s793_s27 + $0x68] sm:$0xff]  ;;  %v312_v26 = vadd.f32 %v294_v18, %v276_v14  ;;  %v313_v27 = vadd.f32 %v295_v19, %v277_v17  ;;  %v322_v28 = vadd.f32 %v304_v23, %v286_v21  ;;  %v278_v31 = vld [vmem:[%s787_s24 + $0x20] sm:$0xff]  ;;  %v288_v36 = vld [vmem:[%s787_s24 + $0x70] sm:$0xff] }
  0x18   : > { %639 = vmatmul.mubr.msk.bf16.vlgmr.msra.gmra.mrb[0].mxu0 %vm346_vm2, %v328_v20  ;;  %v323_v29 = vadd.f32 %v305_v25, %v287_v22  ;;  %v279_v32 = vld [vmem:[%s787_s24 + $0x28] sm:$0xff]  ;;  %v296_v34 = vld [vmem:[%s793_s27 + $0x20] sm:$0xff]  ;;  %v289_v37 = vld [vmem:[%s787_s24 + $0x78] sm:$0xff] }
  0x19   : > { %659 = vmatmul.mubr.msk.bf16.vlgmr.msra.gmra.mrb[0].mxu1 %vm346_vm2, %v333_v24  ;;  %642 = vmatprep.mubr.msk.bf16.mxu0 %vm728_vm1, %v727_v1  ;;  %v329_v30 = vpack.c.bf16 %v313_v27, %v312_v26  ;;  %v297_v35 = vld [vmem:[%s793_s27 + $0x28] sm:$0xff]  ;;  %v306_v38 = vld [vmem:[%s793_s27 + $0x70] sm:$0xff]  ;;  %v307_v39 = vld [vmem:[%s793_s27 + $0x78] sm:$0xff]  ;;  %v314_v40 = vadd.f32 %v296_v34, %v278_v31 }
  0x1a   : > { %662 = vmatprep.mubr.msk.bf16.mxu1 %vm728_vm1, %v727_v1  ;;  %v334_v33 = vpack.c.bf16 %v323_v29, %v322_v28  ;;  %v315_v41 = vadd.f32 %v297_v35, %v279_v32  ;;  %v324_v42 = vadd.f32 %v306_v38, %v288_v36  ;;  %v325_v43 = vadd.f32 %v307_v39, %v289_v37  ;;  %v280_v45 = vld [vmem:[%s787_s24 + $0x30] sm:$0xff]  ;;  %v281_v46 = vld [vmem:[%s787_s24 + $0x38] sm:$0xff]  ;;  %v290_v50 = vld [vmem:[%s787_s24 + $0x80] sm:$0xff] }
  0x1b   : > { %v298_v48 = vld [vmem:[%s793_s27 + $0x30] sm:$0xff]  ;;  %v299_v49 = vld [vmem:[%s793_s27 + $0x38] sm:$0xff]  ;;  %v291_v51 = vld [vmem:[%s787_s24 + $0x88] sm:$0xff] }
  0x1c   : > { %v330_v44 = vpack.c.bf16 %v315_v41, %v314_v40  ;;  %v335_v47 = vpack.c.bf16 %v325_v43, %v324_v42  ;;  %v308_v52 = vld [vmem:[%s793_s27 + $0x80] sm:$0xff]  ;;  %v309_v53 = vld [vmem:[%s793_s27 + $0x88] sm:$0xff]  ;;  %v316_v54 = vadd.f32 %v298_v48, %v280_v45  ;;  %v317_v55 = vadd.f32 %v299_v49, %v281_v46 }
  0x1d   : > { %v326_v56 = vadd.f32 %v308_v52, %v290_v50  ;;  %v327_v57 = vadd.f32 %v309_v53, %v291_v51  ;;  %v282_v59 = vld [vmem:[%s787_s24 + $0x40] sm:$0xff]  ;;  %v283_v61 = vld [vmem:[%s787_s24 + $0x48] sm:$0xff] }
  0x1e   : > { %v331_v58 = vpack.c.bf16 %v317_v55, %v316_v54  ;;  %v300_v62 = vld [vmem:[%s793_s27 + $0x40] sm:$0xff]  ;;  %v301_v63 = vld [vmem:[%s793_s27 + $0x48] sm:$0xff] }
  0x1f   : > { %v336_v60 = vpack.c.bf16 %v327_v57, %v326_v56  ;;  %v318_v0 = vadd.f32 %v300_v62, %v282_v59  ;;  %v319_v2 = vadd.f32 %v301_v63, %v283_v61  ;;  %v857_v4 = vld [vmem:[%s931_s3] ss:$0 sm:$0xff] }
  0x20   : > { %643 = vmatmul.mubr.msk.bf16.gmra.mrb[4].mxu0 %vm346_vm2, %v329_v30 }
  0x21   : > { %663 = vmatmul.mubr.msk.bf16.gmra.mrb[4].mxu1 %vm346_vm2, %v334_v33  ;;  %646 = vmatprep.mubr.msk.bf16.mxu0 %vm728_vm1, %v727_v1  ;;  %v332_v3 = vpack.c.bf16 %v319_v2, %v318_v0 }
  0x22   : > { %666 = vmatprep.mubr.msk.bf16.mxu1 %vm728_vm1, %v727_v1 }
  0x28   : > { %647 = vmatmul.mubr.msk.bf16.gmra.mrb[8].mxu0 %vm346_vm2, %v330_v44 }
  0x29   : > { %667 = vmatmul.mubr.msk.bf16.gmra.mrb[8].mxu1 %vm346_vm2, %v335_v47  ;;  %650 = vmatprep.mubr.msk.bf16.mxu0 %vm728_vm1, %v727_v1 }
  0x2a   : > { %670 = vmatprep.mubr.msk.bf16.mxu1 %vm728_vm1, %v727_v1 }
  0x30   : > { %651 = vmatmul.mubr.msk.bf16.gmra.mrb[12].mxu0 %vm346_vm2, %v331_v58 }
  0x31   : > { %671 = vmatmul.mubr.msk.bf16.gmra.mrb[12].mxu1 %vm346_vm2, %v336_v60  ;;  %654 = vmatprep.mubr.msk.bf16.mxu0 %vm728_vm1, %v727_v1 }
  0x38   : > { %655 = vmatmul.mubr.msk.bf16.gmra.mrb[16].mxu0 %vm346_vm2, %v332_v3 }
  0xeb   : > { %v412_v5 = vpop.f32.mrb[0].mxu0 }
  0xec   : > { %v413_v1 = vadd.f32 %v857_v4, %v412_v5  ;;  %v640_v6 = vpop.f32.mrb[1].mxu0  ;;  %v452_v7 = vpop.f32.mrb[0].mxu1 }
  0xed   : > { %v415_v8 = vpop.f32.mrb[2].mxu0  ;;  %v453_v9 = vadd.f32 %v857_v4, %v452_v7  ;;  %v660_v10 = vpop.f32.mrb[1].mxu1 }
  0xee   : > { %483 = vst.msk [vmem:[%s863_s6] sm:$0xff] %vm346_vm2, %v413_v1  ;;  %v416_v11 = vadd.f32 %v857_v4, %v415_v8  ;;  %v641_v12 = vpop.f32.mrb[3].mxu0  ;;  %v455_v13 = vpop.f32.mrb[2].mxu1 }
  0xef   : > { %493 = vst.msk [vmem:[%s863_s6 + $0x50] sm:$0xff] %vm346_vm2, %v453_v9  ;;  %v456_v14 = vadd.f32 %v857_v4, %v455_v13  ;;  %v661_v15 = vpop.f32.mrb[3].mxu1 }
  0xf0   : > { %484 = vst.msk [vmem:[%s863_s6 + $0x8] sm:$0xff] %vm346_vm2, %v416_v11 }
  0xf1   : > { %494 = vst.msk [vmem:[%s863_s6 + $0x58] sm:$0xff] %vm346_vm2, %v456_v14 }
  0xf3   : > { %v420_v16 = vpop.f32.mrb[4].mxu0 }
  0xf4   : > { %v421_v17 = vadd.f32 %v857_v4, %v420_v16  ;;  %v644_v18 = vpop.f32.mrb[5].mxu0  ;;  %v460_v19 = vpop.f32.mrb[4].mxu1 }
  0xf5   : > { %v423_v20 = vpop.f32.mrb[6].mxu0  ;;  %v461_v21 = vadd.f32 %v857_v4, %v460_v19  ;;  %v664_v22 = vpop.f32.mrb[5].mxu1 }
  0xf6   : > { %485 = vst.msk [vmem:[%s863_s6 + $0x10] sm:$0xff] %vm346_vm2, %v421_v17  ;;  %v424_v23 = vadd.f32 %v857_v4, %v423_v20  ;;  %v645_v24 = vpop.f32.mrb[7].mxu0  ;;  %v463_v25 = vpop.f32.mrb[6].mxu1 }
  0xf7   : > { %495 = vst.msk [vmem:[%s863_s6 + $0x60] sm:$0xff] %vm346_vm2, %v461_v21  ;;  %v464_v26 = vadd.f32 %v857_v4, %v463_v25  ;;  %v665_v27 = vpop.f32.mrb[7].mxu1 }
  0xf8   : > { %486 = vst.msk [vmem:[%s863_s6 + $0x18] sm:$0xff] %vm346_vm2, %v424_v23 }
  0xf9   : > { %496 = vst.msk [vmem:[%s863_s6 + $0x68] sm:$0xff] %vm346_vm2, %v464_v26 }
  0xfb   : > { %v428_v28 = vpop.f32.mrb[8].mxu0 }
  0xfc   : > { %v429_v29 = vadd.f32 %v857_v4, %v428_v28  ;;  %v648_v30 = vpop.f32.mrb[9].mxu0  ;;  %v468_v31 = vpop.f32.mrb[8].mxu1 }
  0xfd   : > { %v431_v32 = vpop.f32.mrb[10].mxu0  ;;  %v469_v33 = vadd.f32 %v857_v4, %v468_v31  ;;  %v668_v34 = vpop.f32.mrb[9].mxu1 }
  0xfe   : > { %487 = vst.msk [vmem:[%s863_s6 + $0x20] sm:$0xff] %vm346_vm2, %v429_v29  ;;  %v432_v35 = vadd.f32 %v857_v4, %v431_v32  ;;  %v649_v36 = vpop.f32.mrb[11].mxu0  ;;  %v471_v37 = vpop.f32.mrb[10].mxu1 }
  0xff   : > { %497 = vst.msk [vmem:[%s863_s6 + $0x70] sm:$0xff] %vm346_vm2, %v469_v33  ;;  %v472_v38 = vadd.f32 %v857_v4, %v471_v37  ;;  %v669_v39 = vpop.f32.mrb[11].mxu1 }
 0x100   : > { %488 = vst.msk [vmem:[%s863_s6 + $0x28] sm:$0xff] %vm346_vm2, %v432_v35 }
 0x101   : > { %498 = vst.msk [vmem:[%s863_s6 + $0x78] sm:$0xff] %vm346_vm2, %v472_v38 }
 0x103   : > { %v436_v40 = vpop.f32.mrb[12].mxu0 }
 0x104   : > { %v437_v41 = vadd.f32 %v857_v4, %v436_v40  ;;  %v652_v42 = vpop.f32.mrb[13].mxu0  ;;  %v476_v43 = vpop.f32.mrb[12].mxu1 }
 0x105   : > { %v439_v44 = vpop.f32.mrb[14].mxu0  ;;  %v477_v45 = vadd.f32 %v857_v4, %v476_v43  ;;  %v672_v46 = vpop.f32.mrb[13].mxu1 }
 0x106   : > { %489 = vst.msk [vmem:[%s863_s6 + $0x30] sm:$0xff] %vm346_vm2, %v437_v41  ;;  %v440_v47 = vadd.f32 %v857_v4, %v439_v44  ;;  %v653_v48 = vpop.f32.mrb[15].mxu0  ;;  %v479_v49 = vpop.f32.mrb[14].mxu1 }
 0x107   : > { %499 = vst.msk [vmem:[%s863_s6 + $0x80] sm:$0xff] %vm346_vm2, %v477_v45  ;;  %v480_v50 = vadd.f32 %v857_v4, %v479_v49  ;;  %v673_v51 = vpop.f32.mrb[15].mxu1 }
 0x108   : > { %490 = vst.msk [vmem:[%s863_s6 + $0x38] sm:$0xff] %vm346_vm2, %v440_v47 }
 0x109   : > { %500 = vst.msk [vmem:[%s863_s6 + $0x88] sm:$0xff] %vm346_vm2, %v480_v50 }
 0x10b   : > { %v444_v52 = vpop.f32.mrb[16].mxu0 }
 0x10c   : > { %v445_v53 = vadd.f32 %v857_v4, %v444_v52  ;;  %v656_v54 = vpop.f32.mrb[17].mxu0 }
 0x10d   : > { %v447_v55 = vpop.f32.mrb[18].mxu0 }
 0x10e   : > { %491 = vst.msk [vmem:[%s863_s6 + $0x40] sm:$0xff] %vm346_vm2, %v445_v53  ;;  %v448_v56 = vadd.f32 %v857_v4, %v447_v55  ;;  %v657_v57 = vpop.f32.mrb[19].mxu0 }
 0x110   : > { %492 = vst.msk [vmem:[%s863_s6 + $0x48] sm:$0xff] %vm346_vm2, %v448_v56 }
 0x111 PF: > { %s14_s17 = sadd.s32 1, %s725_s17   ;;  %s933_s15 = smov %s721_s16 }
 0x112   : > { %p11_p5 = scmp.ge.s32.totalorder %s14_s17, 4   ;;  %s934_s16 = smov %s936_s18 }
 0x114   :  { %13 = sbr.rel (!%p11_p5) target bundleno = 2 (0x2), region = 69 }

</bundles_post_ra>
